<compile_context>
chip_gen: v5e
topology: v5e:2x2
jax: 0.10.0
libtpu: 0.0.40
codegen_flags: <defaults>
</compile_context>

<pallas_src>
from functools import partial

import numpy as np
import jax
import jax.numpy as jnp
from jax import lax
from jax.experimental import pallas as pl
from jax.experimental.pallas import tpu as pltpu

HIDDEN_SIZE = 10
INPUT_SIZE = 15
NUM_LAYERS = 3


# ------------------------------ Pallas kernel --------------------------------

def fused_lstm_fc_kernel(seq, batch, hidden,
                         x_ref,
                         wih0_ref, whh0_ref, b0_ref,
                         wih1_ref, whh1_ref, b1_ref,
                         wih2_ref, whh2_ref, b2_ref,
                         fcw_ref, fcb_ref,
                         o_ref,
                         ya_sc, yb_sc):
    """3-layer LSTM over the whole sequence + Linear(H, 1) head, fused.

    x_ref:    (seq*batch, input_size) f32
    wih*_ref: (in_dim, 4H) f32   gates concatenated as (i, f, o, g)
    whh*_ref: (H, 4H)      f32
    b*_ref:   (1, 4H)      f32   (b_ih + b_hh pre-summed)
    fcw_ref:  (H, 1) f32,  fcb_ref: (1, 1) f32
    o_ref:    (seq*batch, 1) f32
    ya_sc/yb_sc: (seq*batch, H) f32 VMEM scratch (ping-pong inter-layer acts)
    """
    H = hidden
    layers = ((wih0_ref, whh0_ref, b0_ref),
              (wih1_ref, whh1_ref, b1_ref),
              (wih2_ref, whh2_ref, b2_ref))
    scratches = (ya_sc, yb_sc)

    cur = x_ref[...]                                   # (seq*batch, in_dim)
    for li, (wih_ref, whh_ref, b_ref) in enumerate(layers):
        whh = whh_ref[...]                             # (H, 4H)
        y_sc = scratches[li % 2]

        # Hoisted input projection for ALL timesteps: one MXU matmul per layer.
        xp = (jnp.dot(cur, wih_ref[...], preferred_element_type=jnp.float32)
              + b_ref[...])                            # (seq*batch, 4H)

        h = jnp.zeros((batch, H), jnp.float32)
        c = jnp.zeros((batch, H), jnp.float32)
        # Fully unrolled time loop: h/c stay in vregs, one dot per step.
        for t in range(seq):
            x_t = xp[t * batch:(t + 1) * batch, :]     # (batch, 4H), static slice
            gates = x_t + jnp.dot(h, whh, preferred_element_type=jnp.float32)
            sig = jax.nn.sigmoid(gates[:, :3 * H])     # (batch, 3H): i | f | o
            g_g = jnp.tanh(gates[:, 3 * H:])           # (batch, H)
            i_g = sig[:, :H]
            f_g = sig[:, H:2 * H]
            o_g = sig[:, 2 * H:]
            c = f_g * c + i_g * g_g
            h = o_g * jnp.tanh(c)
            y_sc[pl.ds(t * batch, batch), :] = h       # off the recurrent path
        cur = y_sc[...]                                # (seq*batch, H)

    # Fused FC epilogue: (seq*batch, H) @ (H, 1) + b
    o_ref[...] = (jnp.dot(cur, fcw_ref[...], preferred_element_type=jnp.float32)
                  + fcb_ref[...])


# -------------------------------- Wrapper -------------------------------------

def lstm_forward(inputs, params):
    """Full module forward: 3-layer LSTM + Linear(hidden, 1).

    inputs: (seq, batch, input_size)  ->  (seq, batch, 1)
    (out.squeeze(0) in the PyTorch module is a no-op for seq > 1.)
    """
    seq, batch, in_dim = inputs.shape
    H = params["lstm"][0]["whh"].shape[0]
    x2d = inputs.reshape(seq * batch, in_dim)

    args = [x2d]
    for layer in params["lstm"]:
        args += [layer["wih"], layer["whh"], layer["b"]]
    args += [params["fc_w"], params["fc_b"]]

    out2d = pl.pallas_call(
        partial(fused_lstm_fc_kernel, seq, batch, H),
        out_shape=jax.ShapeDtypeStruct((seq * batch, 1), jnp.float32),
        in_specs=[pl.BlockSpec(memory_space=pltpu.MemorySpace.VMEM)] * len(args),
        out_specs=pl.BlockSpec(memory_space=pltpu.MemorySpace.VMEM),
        scratch_shapes=[pltpu.VMEM((seq * batch, H), jnp.float32),
                        pltpu.VMEM((seq * batch, H), jnp.float32)],
    )(*args)
    return out2d.reshape(seq, batch, 1)


# ---------------------------- Param construction ------------------------------

def init_params(key, input_size, hidden_size, num_layers):
    """Deterministic init; same distribution family as PyTorch (U(-k, k), k=1/sqrt(H)).

    Returns (kernel_params, reference_params) built from the SAME underlying
    PyTorch-layout weights, so the test validates the gate re-packing.
    """
    H = hidden_size
    k = 1.0 / np.sqrt(H)
    perm = np.array([0, 1, 3, 2])     # PyTorch (i, f, g, o) -> kernel (i, f, o, g)
    kern_layers, ref_layers = [], []
    for l in range(num_layers):
        in_dim = input_size if l == 0 else H
        key, k1, k2, k3, k4 = jax.random.split(key, 5)
        # PyTorch layouts: weight_ih (4H, in_dim), weight_hh (4H, H), biases (4H,)
        w_ih = jax.random.uniform(k1, (4 * H, in_dim), jnp.float32, -k, k)
        w_hh = jax.random.uniform(k2, (4 * H, H), jnp.float32, -k, k)
        b_ih = jax.random.uniform(k3, (4 * H,), jnp.float32, -k, k)
        b_hh = jax.random.uniform(k4, (4 * H,), jnp.float32, -k, k)

        # Reference layout: per-gate (i, f, g, o), x @ W form.
        wih_g = jnp.transpose(w_ih.reshape(4, H, in_dim), (0, 2, 1))  # (4, in, H)
        whh_g = jnp.transpose(w_hh.reshape(4, H, H), (0, 2, 1))       # (4, H, H)
        b_g = (b_ih + b_hh).reshape(4, 1, H)
        ref_layers.append({"wih": wih_g, "whh": whh_g, "b": b_g})

        # Kernel layout: gates concatenated along output dim, order (i, f, o, g).
        wih_cat = jnp.transpose(wih_g[perm], (1, 0, 2)).reshape(in_dim, 4 * H)
        whh_cat = jnp.transpose(whh_g[perm], (1, 0, 2)).reshape(H, 4 * H)
        b_cat = b_g[perm].reshape(1, 4 * H)
        kern_layers.append({"wih": wih_cat, "whh": whh_cat, "b": b_cat})

    key, k5, k6 = jax.random.split(key, 3)
    fc_w = jax.random.uniform(k5, (1, H), jnp.float32, -k, k)   # torch Linear (out, in)
    fc_b = jax.random.uniform(k6, (1,), jnp.float32, -k, k)
    fc_w_t = jnp.transpose(fc_w)            # (H, 1) for x @ W
    fc_b_2d = fc_b.reshape(1, 1)

    kern = {"lstm": kern_layers, "fc_w": fc_w_t, "fc_b": fc_b_2d}
    ref = {"lstm": ref_layers, "fc_w": fc_w_t, "fc_b": fc_b_2d}
    return kern, ref


# ---------------------------- Pure-JAX reference ------------------------------

def reference_forward(inputs, params):
    x = inputs
    for layer in params["lstm"]:
        wih, whh, b = layer["wih"], layer["whh"], layer["b"]
        batch = x.shape[1]
        H = whh.shape[-1]
        h = jnp.zeros((batch, H), jnp.float32)
        c = jnp.zeros((batch, H), jnp.float32)

        def step(carry, x_t):
            h, c = carry
            g = [x_t @ wih[k] + h @ whh[k] + b[k] for k in range(4)]
            i_g = jax.nn.sigmoid(g[0])
            f_g = jax.nn.sigmoid(g[1])
            g_g = jnp.tanh(g[2])
            o_g = jax.nn.sigmoid(g[3])
            c = f_g * c + i_g * g_g
            h = o_g * jnp.tanh(c)
            return (h, c), h

        (_, _), ys = lax.scan(step, (h, c), x)
        x = ys
    return x @ params["fc_w"] + params["fc_b"]


# ----------------------------------- Main --------------------------------------

if __name__ == "__main__":
    key = jax.random.PRNGKey(0)
    key, pkey, xkey = jax.random.split(key, 3)

    kern_params, ref_params = init_params(pkey, INPUT_SIZE, HIDDEN_SIZE, NUM_LAYERS)

    seq, batch = 8, 2
    inputs = jax.random.normal(xkey, (seq, batch, INPUT_SIZE), jnp.float32)

    fwd = jax.jit(lstm_forward)
    out = jax.block_until_ready(fwd(inputs, kern_params))

    ref = jax.block_until_ready(reference_forward(inputs, ref_params))
    assert out.shape == (seq, batch, 1), out.shape
    np.testing.assert_allclose(np.asarray(out), np.asarray(ref), rtol=1e-5, atol=1e-5)

    print("KERNEL_OK")
</pallas_src>

<mosaic_0001>
module attributes {stable_mosaic.version = 11 : i64} {
  func.func @fused_lstm_fc_kernel(%arg0: memref<16x15xf32, #tpu.memory_space<vmem>>, %arg1: memref<15x40xf32, #tpu.memory_space<vmem>>, %arg2: memref<10x40xf32, #tpu.memory_space<vmem>>, %arg3: memref<1x40xf32, #tpu.memory_space<vmem>>, %arg4: memref<10x40xf32, #tpu.memory_space<vmem>>, %arg5: memref<10x40xf32, #tpu.memory_space<vmem>>, %arg6: memref<1x40xf32, #tpu.memory_space<vmem>>, %arg7: memref<10x40xf32, #tpu.memory_space<vmem>>, %arg8: memref<10x40xf32, #tpu.memory_space<vmem>>, %arg9: memref<1x40xf32, #tpu.memory_space<vmem>>, %arg10: memref<10x1xf32, #tpu.memory_space<vmem>>, %arg11: memref<1x1xf32, #tpu.memory_space<vmem>>, %arg12: memref<16x1xf32, #tpu.memory_space<vmem>>, %arg13: memref<16x10xf32, #tpu.memory_space<vmem>>, %arg14: memref<16x10xf32, #tpu.memory_space<vmem>>) attributes {dimension_semantics = [], scalar_prefetch = 0 : i64, scratch_operands = 2 : i64, tpu.core_type = #tpu.core_type<tc>} {
    %c0 = arith.constant 0 : index
    %c0_0 = arith.constant 0 : index
    %0 = vector.load %arg0[%c0, %c0_0] : memref<16x15xf32, #tpu.memory_space<vmem>>, vector<16x15xf32>
    %c0_1 = arith.constant 0 : index
    %c0_2 = arith.constant 0 : index
    %1 = vector.load %arg2[%c0_1, %c0_2] : memref<10x40xf32, #tpu.memory_space<vmem>>, vector<10x40xf32>
    %c0_3 = arith.constant 0 : index
    %c0_4 = arith.constant 0 : index
    %2 = vector.load %arg1[%c0_3, %c0_4] : memref<15x40xf32, #tpu.memory_space<vmem>>, vector<15x40xf32>
    %cst = arith.constant dense<0.000000e+00> : vector<16x40xf32>
    %3 = tpu.matmul %0, %2, %cst {dimension_numbers = #tpu.dot_dimension_numbers<[1], [0], [0], [1], [0, 0, 1, 1], [], []>} : vector<16x15xf32>, vector<15x40xf32>, vector<16x40xf32> -> vector<16x40xf32>
    %c0_5 = arith.constant 0 : index
    %c0_6 = arith.constant 0 : index
    %4 = vector.load %arg3[%c0_5, %c0_6] : memref<1x40xf32, #tpu.memory_space<vmem>>, vector<1x40xf32>
    %5 = vector.broadcast %4 : vector<1x40xf32> to vector<16x40xf32>
    %6 = arith.addf %3, %5 : vector<16x40xf32>
    %cst_7 = arith.constant 0.000000e+00 : f32
    %7 = vector.broadcast %cst_7 : f32 to vector<2x10xf32>
    %cst_8 = arith.constant 0.000000e+00 : f32
    %8 = vector.broadcast %cst_8 : f32 to vector<2x10xf32>
    %9 = vector.extract_strided_slice %6 {offsets = [0, 0], sizes = [2, 40], strides = [1, 1]} : vector<16x40xf32> to vector<2x40xf32>
    %cst_9 = arith.constant dense<0.000000e+00> : vector<2x40xf32>
    %10 = tpu.matmul %7, %1, %cst_9 {dimension_numbers = #tpu.dot_dimension_numbers<[1], [0], [0], [1], [0, 0, 1, 1], [], []>} : vector<2x10xf32>, vector<10x40xf32>, vector<2x40xf32> -> vector<2x40xf32>
    %11 = arith.addf %9, %10 : vector<2x40xf32>
    %12 = vector.extract_strided_slice %11 {offsets = [0, 0], sizes = [2, 30], strides = [1, 1]} : vector<2x40xf32> to vector<2x30xf32>
    %13 = arith.negf %12 : vector<2x30xf32>
    %14 = math.exp %13 : vector<2x30xf32>
    %cst_10 = arith.constant 1.000000e+00 : f32
    %15 = vector.broadcast %cst_10 : f32 to vector<2x30xf32>
    %16 = arith.addf %15, %14 : vector<2x30xf32>
    %17 = arith.divf %15, %16 : vector<2x30xf32>
    %18 = vector.extract_strided_slice %11 {offsets = [0, 30], sizes = [2, 10], strides = [1, 1]} : vector<2x40xf32> to vector<2x10xf32>
    %19 = math.tanh %18 : vector<2x10xf32>
    %20 = vector.extract_strided_slice %17 {offsets = [0, 0], sizes = [2, 10], strides = [1, 1]} : vector<2x30xf32> to vector<2x10xf32>
    %21 = vector.extract_strided_slice %17 {offsets = [0, 10], sizes = [2, 10], strides = [1, 1]} : vector<2x30xf32> to vector<2x10xf32>
    %22 = vector.extract_strided_slice %17 {offsets = [0, 20], sizes = [2, 10], strides = [1, 1]} : vector<2x30xf32> to vector<2x10xf32>
    %23 = arith.mulf %21, %8 : vector<2x10xf32>
    %24 = arith.mulf %20, %19 : vector<2x10xf32>
    %25 = arith.addf %23, %24 : vector<2x10xf32>
    %26 = math.tanh %25 : vector<2x10xf32>
    %27 = arith.mulf %22, %26 : vector<2x10xf32>
    %c0_11 = arith.constant 0 : index
    %c0_12 = arith.constant 0 : index
    %28 = vector.load %arg13[%c0_11, %c0_12] : memref<16x10xf32, #tpu.memory_space<vmem>>, vector<2x10xf32>
    tpu.vector_store %arg13[%c0_11, %c0_12], %27 {strides = array<i32>} : memref<16x10xf32, #tpu.memory_space<vmem>>, vector<2x10xf32>,
    %29 = vector.extract_strided_slice %6 {offsets = [2, 0], sizes = [2, 40], strides = [1, 1]} : vector<16x40xf32> to vector<2x40xf32>
    %cst_13 = arith.constant dense<0.000000e+00> : vector<2x40xf32>
    %30 = tpu.matmul %27, %1, %cst_13 {dimension_numbers = #tpu.dot_dimension_numbers<[1], [0], [0], [1], [0, 0, 1, 1], [], []>} : vector<2x10xf32>, vector<10x40xf32>, vector<2x40xf32> -> vector<2x40xf32>
    %31 = arith.addf %29, %30 : vector<2x40xf32>
    %32 = vector.extract_strided_slice %31 {offsets = [0, 0], sizes = [2, 30], strides = [1, 1]} : vector<2x40xf32> to vector<2x30xf32>
    %33 = arith.negf %32 : vector<2x30xf32>
    %34 = math.exp %33 : vector<2x30xf32>
    %cst_14 = arith.constant 1.000000e+00 : f32
    %35 = vector.broadcast %cst_14 : f32 to vector<2x30xf32>
    %36 = arith.addf %35, %34 : vector<2x30xf32>
    %37 = arith.divf %35, %36 : vector<2x30xf32>
    %38 = vector.extract_strided_slice %31 {offsets = [0, 30], sizes = [2, 10], strides = [1, 1]} : vector<2x40xf32> to vector<2x10xf32>
    %39 = math.tanh %38 : vector<2x10xf32>
    %40 = vector.extract_strided_slice %37 {offsets = [0, 0], sizes = [2, 10], strides = [1, 1]} : vector<2x30xf32> to vector<2x10xf32>
    %41 = vector.extract_strided_slice %37 {offsets = [0, 10], sizes = [2, 10], strides = [1, 1]} : vector<2x30xf32> to vector<2x10xf32>
    %42 = vector.extract_strided_slice %37 {offsets = [0, 20], sizes = [2, 10], strides = [1, 1]} : vector<2x30xf32> to vector<2x10xf32>
    %43 = arith.mulf %41, %25 : vector<2x10xf32>
    %44 = arith.mulf %40, %39 : vector<2x10xf32>
    %45 = arith.addf %43, %44 : vector<2x10xf32>
    %46 = math.tanh %45 : vector<2x10xf32>
    %47 = arith.mulf %42, %46 : vector<2x10xf32>
    %c2 = arith.constant 2 : index
    %c0_15 = arith.constant 0 : index
    %48 = vector.load %arg13[%c2, %c0_15] : memref<16x10xf32, #tpu.memory_space<vmem>>, vector<2x10xf32>
    tpu.vector_store %arg13[%c2, %c0_15], %47 {strides = array<i32>} : memref<16x10xf32, #tpu.memory_space<vmem>>, vector<2x10xf32>,
    %49 = vector.extract_strided_slice %6 {offsets = [4, 0], sizes = [2, 40], strides = [1, 1]} : vector<16x40xf32> to vector<2x40xf32>
    %cst_16 = arith.constant dense<0.000000e+00> : vector<2x40xf32>
    %50 = tpu.matmul %47, %1, %cst_16 {dimension_numbers = #tpu.dot_dimension_numbers<[1], [0], [0], [1], [0, 0, 1, 1], [], []>} : vector<2x10xf32>, vector<10x40xf32>, vector<2x40xf32> -> vector<2x40xf32>
    %51 = arith.addf %49, %50 : vector<2x40xf32>
    %52 = vector.extract_strided_slice %51 {offsets = [0, 0], sizes = [2, 30], strides = [1, 1]} : vector<2x40xf32> to vector<2x30xf32>
    %53 = arith.negf %52 : vector<2x30xf32>
    %54 = math.exp %53 : vector<2x30xf32>
    %cst_17 = arith.constant 1.000000e+00 : f32
    %55 = vector.broadcast %cst_17 : f32 to vector<2x30xf32>
    %56 = arith.addf %55, %54 : vector<2x30xf32>
    %57 = arith.divf %55, %56 : vector<2x30xf32>
    %58 = vector.extract_strided_slice %51 {offsets = [0, 30], sizes = [2, 10], strides = [1, 1]} : vector<2x40xf32> to vector<2x10xf32>
    %59 = math.tanh %58 : vector<2x10xf32>
    %60 = vector.extract_strided_slice %57 {offsets = [0, 0], sizes = [2, 10], strides = [1, 1]} : vector<2x30xf32> to vector<2x10xf32>
    %61 = vector.extract_strided_slice %57 {offsets = [0, 10], sizes = [2, 10], strides = [1, 1]} : vector<2x30xf32> to vector<2x10xf32>
    %62 = vector.extract_strided_slice %57 {offsets = [0, 20], sizes = [2, 10], strides = [1, 1]} : vector<2x30xf32> to vector<2x10xf32>
    %63 = arith.mulf %61, %45 : vector<2x10xf32>
    %64 = arith.mulf %60, %59 : vector<2x10xf32>
    %65 = arith.addf %63, %64 : vector<2x10xf32>
    %66 = math.tanh %65 : vector<2x10xf32>
    %67 = arith.mulf %62, %66 : vector<2x10xf32>
    %c4 = arith.constant 4 : index
    %c0_18 = arith.constant 0 : index
    %68 = vector.load %arg13[%c4, %c0_18] : memref<16x10xf32, #tpu.memory_space<vmem>>, vector<2x10xf32>
    tpu.vector_store %arg13[%c4, %c0_18], %67 {strides = array<i32>} : memref<16x10xf32, #tpu.memory_space<vmem>>, vector<2x10xf32>,
    %69 = vector.extract_strided_slice %6 {offsets = [6, 0], sizes = [2, 40], strides = [1, 1]} : vector<16x40xf32> to vector<2x40xf32>
    %cst_19 = arith.constant dense<0.000000e+00> : vector<2x40xf32>
    %70 = tpu.matmul %67, %1, %cst_19 {dimension_numbers = #tpu.dot_dimension_numbers<[1], [0], [0], [1], [0, 0, 1, 1], [], []>} : vector<2x10xf32>, vector<10x40xf32>, vector<2x40xf32> -> vector<2x40xf32>
    %71 = arith.addf %69, %70 : vector<2x40xf32>
    %72 = vector.extract_strided_slice %71 {offsets = [0, 0], sizes = [2, 30], strides = [1, 1]} : vector<2x40xf32> to vector<2x30xf32>
    %73 = arith.negf %72 : vector<2x30xf32>
    %74 = math.exp %73 : vector<2x30xf32>
    %cst_20 = arith.constant 1.000000e+00 : f32
    %75 = vector.broadcast %cst_20 : f32 to vector<2x30xf32>
    %76 = arith.addf %75, %74 : vector<2x30xf32>
    %77 = arith.divf %75, %76 : vector<2x30xf32>
    %78 = vector.extract_strided_slice %71 {offsets = [0, 30], sizes = [2, 10], strides = [1, 1]} : vector<2x40xf32> to vector<2x10xf32>
    %79 = math.tanh %78 : vector<2x10xf32>
    %80 = vector.extract_strided_slice %77 {offsets = [0, 0], sizes = [2, 10], strides = [1, 1]} : vector<2x30xf32> to vector<2x10xf32>
    %81 = vector.extract_strided_slice %77 {offsets = [0, 10], sizes = [2, 10], strides = [1, 1]} : vector<2x30xf32> to vector<2x10xf32>
    %82 = vector.extract_strided_slice %77 {offsets = [0, 20], sizes = [2, 10], strides = [1, 1]} : vector<2x30xf32> to vector<2x10xf32>
    %83 = arith.mulf %81, %65 : vector<2x10xf32>
    %84 = arith.mulf %80, %79 : vector<2x10xf32>
    %85 = arith.addf %83, %84 : vector<2x10xf32>
    %86 = math.tanh %85 : vector<2x10xf32>
    %87 = arith.mulf %82, %86 : vector<2x10xf32>
    %c6 = arith.constant 6 : index
    %c0_21 = arith.constant 0 : index
    %88 = vector.load %arg13[%c6, %c0_21] : memref<16x10xf32, #tpu.memory_space<vmem>>, vector<2x10xf32>
    tpu.vector_store %arg13[%c6, %c0_21], %87 {strides = array<i32>} : memref<16x10xf32, #tpu.memory_space<vmem>>, vector<2x10xf32>,
    %89 = vector.extract_strided_slice %6 {offsets = [8, 0], sizes = [2, 40], strides = [1, 1]} : vector<16x40xf32> to vector<2x40xf32>
    %cst_22 = arith.constant dense<0.000000e+00> : vector<2x40xf32>
    %90 = tpu.matmul %87, %1, %cst_22 {dimension_numbers = #tpu.dot_dimension_numbers<[1], [0], [0], [1], [0, 0, 1, 1], [], []>} : vector<2x10xf32>, vector<10x40xf32>, vector<2x40xf32> -> vector<2x40xf32>
    %91 = arith.addf %89, %90 : vector<2x40xf32>
    %92 = vector.extract_strided_slice %91 {offsets = [0, 0], sizes = [2, 30], strides = [1, 1]} : vector<2x40xf32> to vector<2x30xf32>
    %93 = arith.negf %92 : vector<2x30xf32>
    %94 = math.exp %93 : vector<2x30xf32>
    %cst_23 = arith.constant 1.000000e+00 : f32
    %95 = vector.broadcast %cst_23 : f32 to vector<2x30xf32>
    %96 = arith.addf %95, %94 : vector<2x30xf32>
    %97 = arith.divf %95, %96 : vector<2x30xf32>
    %98 = vector.extract_strided_slice %91 {offsets = [0, 30], sizes = [2, 10], strides = [1, 1]} : vector<2x40xf32> to vector<2x10xf32>
    %99 = math.tanh %98 : vector<2x10xf32>
    %100 = vector.extract_strided_slice %97 {offsets = [0, 0], sizes = [2, 10], strides = [1, 1]} : vector<2x30xf32> to vector<2x10xf32>
    %101 = vector.extract_strided_slice %97 {offsets = [0, 10], sizes = [2, 10], strides = [1, 1]} : vector<2x30xf32> to vector<2x10xf32>
    %102 = vector.extract_strided_slice %97 {offsets = [0, 20], sizes = [2, 10], strides = [1, 1]} : vector<2x30xf32> to vector<2x10xf32>
    %103 = arith.mulf %101, %85 : vector<2x10xf32>
    %104 = arith.mulf %100, %99 : vector<2x10xf32>
    %105 = arith.addf %103, %104 : vector<2x10xf32>
    %106 = math.tanh %105 : vector<2x10xf32>
    %107 = arith.mulf %102, %106 : vector<2x10xf32>
    %c8 = arith.constant 8 : index
    %c0_24 = arith.constant 0 : index
    %108 = vector.load %arg13[%c8, %c0_24] : memref<16x10xf32, #tpu.memory_space<vmem>>, vector<2x10xf32>
    tpu.vector_store %arg13[%c8, %c0_24], %107 {strides = array<i32>} : memref<16x10xf32, #tpu.memory_space<vmem>>, vector<2x10xf32>,
    %109 = vector.extract_strided_slice %6 {offsets = [10, 0], sizes = [2, 40], strides = [1, 1]} : vector<16x40xf32> to vector<2x40xf32>
    %cst_25 = arith.constant dense<0.000000e+00> : vector<2x40xf32>
    %110 = tpu.matmul %107, %1, %cst_25 {dimension_numbers = #tpu.dot_dimension_numbers<[1], [0], [0], [1], [0, 0, 1, 1], [], []>} : vector<2x10xf32>, vector<10x40xf32>, vector<2x40xf32> -> vector<2x40xf32>
    %111 = arith.addf %109, %110 : vector<2x40xf32>
    %112 = vector.extract_strided_slice %111 {offsets = [0, 0], sizes = [2, 30], strides = [1, 1]} : vector<2x40xf32> to vector<2x30xf32>
    %113 = arith.negf %112 : vector<2x30xf32>
    %114 = math.exp %113 : vector<2x30xf32>
    %cst_26 = arith.constant 1.000000e+00 : f32
    %115 = vector.broadcast %cst_26 : f32 to vector<2x30xf32>
    %116 = arith.addf %115, %114 : vector<2x30xf32>
    %117 = arith.divf %115, %116 : vector<2x30xf32>
    %118 = vector.extract_strided_slice %111 {offsets = [0, 30], sizes = [2, 10], strides = [1, 1]} : vector<2x40xf32> to vector<2x10xf32>
    %119 = math.tanh %118 : vector<2x10xf32>
    %120 = vector.extract_strided_slice %117 {offsets = [0, 0], sizes = [2, 10], strides = [1, 1]} : vector<2x30xf32> to vector<2x10xf32>
    %121 = vector.extract_strided_slice %117 {offsets = [0, 10], sizes = [2, 10], strides = [1, 1]} : vector<2x30xf32> to vector<2x10xf32>
    %122 = vector.extract_strided_slice %117 {offsets = [0, 20], sizes = [2, 10], strides = [1, 1]} : vector<2x30xf32> to vector<2x10xf32>
    %123 = arith.mulf %121, %105 : vector<2x10xf32>
    %124 = arith.mulf %120, %119 : vector<2x10xf32>
    %125 = arith.addf %123, %124 : vector<2x10xf32>
    %126 = math.tanh %125 : vector<2x10xf32>
    %127 = arith.mulf %122, %126 : vector<2x10xf32>
    %c10 = arith.constant 10 : index
    %c0_27 = arith.constant 0 : index
    %128 = vector.load %arg13[%c10, %c0_27] : memref<16x10xf32, #tpu.memory_space<vmem>>, vector<2x10xf32>
    tpu.vector_store %arg13[%c10, %c0_27], %127 {strides = array<i32>} : memref<16x10xf32, #tpu.memory_space<vmem>>, vector<2x10xf32>,
    %129 = vector.extract_strided_slice %6 {offsets = [12, 0], sizes = [2, 40], strides = [1, 1]} : vector<16x40xf32> to vector<2x40xf32>
    %cst_28 = arith.constant dense<0.000000e+00> : vector<2x40xf32>
    %130 = tpu.matmul %127, %1, %cst_28 {dimension_numbers = #tpu.dot_dimension_numbers<[1], [0], [0], [1], [0, 0, 1, 1], [], []>} : vector<2x10xf32>, vector<10x40xf32>, vector<2x40xf32> -> vector<2x40xf32>
    %131 = arith.addf %129, %130 : vector<2x40xf32>
    %132 = vector.extract_strided_slice %131 {offsets = [0, 0], sizes = [2, 30], strides = [1, 1]} : vector<2x40xf32> to vector<2x30xf32>
    %133 = arith.negf %132 : vector<2x30xf32>
    %134 = math.exp %133 : vector<2x30xf32>
    %cst_29 = arith.constant 1.000000e+00 : f32
    %135 = vector.broadcast %cst_29 : f32 to vector<2x30xf32>
    %136 = arith.addf %135, %134 : vector<2x30xf32>
    %137 = arith.divf %135, %136 : vector<2x30xf32>
    %138 = vector.extract_strided_slice %131 {offsets = [0, 30], sizes = [2, 10], strides = [1, 1]} : vector<2x40xf32> to vector<2x10xf32>
    %139 = math.tanh %138 : vector<2x10xf32>
    %140 = vector.extract_strided_slice %137 {offsets = [0, 0], sizes = [2, 10], strides = [1, 1]} : vector<2x30xf32> to vector<2x10xf32>
    %141 = vector.extract_strided_slice %137 {offsets = [0, 10], sizes = [2, 10], strides = [1, 1]} : vector<2x30xf32> to vector<2x10xf32>
    %142 = vector.extract_strided_slice %137 {offsets = [0, 20], sizes = [2, 10], strides = [1, 1]} : vector<2x30xf32> to vector<2x10xf32>
    %143 = arith.mulf %141, %125 : vector<2x10xf32>
    %144 = arith.mulf %140, %139 : vector<2x10xf32>
    %145 = arith.addf %143, %144 : vector<2x10xf32>
    %146 = math.tanh %145 : vector<2x10xf32>
    %147 = arith.mulf %142, %146 : vector<2x10xf32>
    %c12 = arith.constant 12 : index
    %c0_30 = arith.constant 0 : index
    %148 = vector.load %arg13[%c12, %c0_30] : memref<16x10xf32, #tpu.memory_space<vmem>>, vector<2x10xf32>
    tpu.vector_store %arg13[%c12, %c0_30], %147 {strides = array<i32>} : memref<16x10xf32, #tpu.memory_space<vmem>>, vector<2x10xf32>,
    %149 = vector.extract_strided_slice %6 {offsets = [14, 0], sizes = [2, 40], strides = [1, 1]} : vector<16x40xf32> to vector<2x40xf32>
    %cst_31 = arith.constant dense<0.000000e+00> : vector<2x40xf32>
    %150 = tpu.matmul %147, %1, %cst_31 {dimension_numbers = #tpu.dot_dimension_numbers<[1], [0], [0], [1], [0, 0, 1, 1], [], []>} : vector<2x10xf32>, vector<10x40xf32>, vector<2x40xf32> -> vector<2x40xf32>
    %151 = arith.addf %149, %150 : vector<2x40xf32>
    %152 = vector.extract_strided_slice %151 {offsets = [0, 0], sizes = [2, 30], strides = [1, 1]} : vector<2x40xf32> to vector<2x30xf32>
    %153 = arith.negf %152 : vector<2x30xf32>
    %154 = math.exp %153 : vector<2x30xf32>
    %cst_32 = arith.constant 1.000000e+00 : f32
    %155 = vector.broadcast %cst_32 : f32 to vector<2x30xf32>
    %156 = arith.addf %155, %154 : vector<2x30xf32>
    %157 = arith.divf %155, %156 : vector<2x30xf32>
    %158 = vector.extract_strided_slice %151 {offsets = [0, 30], sizes = [2, 10], strides = [1, 1]} : vector<2x40xf32> to vector<2x10xf32>
    %159 = math.tanh %158 : vector<2x10xf32>
    %160 = vector.extract_strided_slice %157 {offsets = [0, 0], sizes = [2, 10], strides = [1, 1]} : vector<2x30xf32> to vector<2x10xf32>
    %161 = vector.extract_strided_slice %157 {offsets = [0, 10], sizes = [2, 10], strides = [1, 1]} : vector<2x30xf32> to vector<2x10xf32>
    %162 = vector.extract_strided_slice %157 {offsets = [0, 20], sizes = [2, 10], strides = [1, 1]} : vector<2x30xf32> to vector<2x10xf32>
    %163 = arith.mulf %161, %145 : vector<2x10xf32>
    %164 = arith.mulf %160, %159 : vector<2x10xf32>
    %165 = arith.addf %163, %164 : vector<2x10xf32>
    %166 = math.tanh %165 : vector<2x10xf32>
    %167 = arith.mulf %162, %166 : vector<2x10xf32>
    %c14 = arith.constant 14 : index
    %c0_33 = arith.constant 0 : index
    %168 = vector.load %arg13[%c14, %c0_33] : memref<16x10xf32, #tpu.memory_space<vmem>>, vector<2x10xf32>
    tpu.vector_store %arg13[%c14, %c0_33], %167 {strides = array<i32>} : memref<16x10xf32, #tpu.memory_space<vmem>>, vector<2x10xf32>,
    %c0_34 = arith.constant 0 : index
    %c0_35 = arith.constant 0 : index
    %169 = vector.load %arg13[%c0_34, %c0_35] : memref<16x10xf32, #tpu.memory_space<vmem>>, vector<16x10xf32>
    %c0_36 = arith.constant 0 : index
    %c0_37 = arith.constant 0 : index
    %170 = vector.load %arg5[%c0_36, %c0_37] : memref<10x40xf32, #tpu.memory_space<vmem>>, vector<10x40xf32>
    %c0_38 = arith.constant 0 : index
    %c0_39 = arith.constant 0 : index
    %171 = vector.load %arg4[%c0_38, %c0_39] : memref<10x40xf32, #tpu.memory_space<vmem>>, vector<10x40xf32>
    %cst_40 = arith.constant dense<0.000000e+00> : vector<16x40xf32>
    %172 = tpu.matmul %169, %171, %cst_40 {dimension_numbers = #tpu.dot_dimension_numbers<[1], [0], [0], [1], [0, 0, 1, 1], [], []>} : vector<16x10xf32>, vector<10x40xf32>, vector<16x40xf32> -> vector<16x40xf32>
    %c0_41 = arith.constant 0 : index
    %c0_42 = arith.constant 0 : index
    %173 = vector.load %arg6[%c0_41, %c0_42] : memref<1x40xf32, #tpu.memory_space<vmem>>, vector<1x40xf32>
    %174 = vector.broadcast %173 : vector<1x40xf32> to vector<16x40xf32>
    %175 = arith.addf %172, %174 : vector<16x40xf32>
    %cst_43 = arith.constant 0.000000e+00 : f32
    %176 = vector.broadcast %cst_43 : f32 to vector<2x10xf32>
    %cst_44 = arith.constant 0.000000e+00 : f32
    %177 = vector.broadcast %cst_44 : f32 to vector<2x10xf32>
    %178 = vector.extract_strided_slice %175 {offsets = [0, 0], sizes = [2, 40], strides = [1, 1]} : vector<16x40xf32> to vector<2x40xf32>
    %cst_45 = arith.constant dense<0.000000e+00> : vector<2x40xf32>
    %179 = tpu.matmul %176, %170, %cst_45 {dimension_numbers = #tpu.dot_dimension_numbers<[1], [0], [0], [1], [0, 0, 1, 1], [], []>} : vector<2x10xf32>, vector<10x40xf32>, vector<2x40xf32> -> vector<2x40xf32>
    %180 = arith.addf %178, %179 : vector<2x40xf32>
    %181 = vector.extract_strided_slice %180 {offsets = [0, 0], sizes = [2, 30], strides = [1, 1]} : vector<2x40xf32> to vector<2x30xf32>
    %182 = arith.negf %181 : vector<2x30xf32>
    %183 = math.exp %182 : vector<2x30xf32>
    %cst_46 = arith.constant 1.000000e+00 : f32
    %184 = vector.broadcast %cst_46 : f32 to vector<2x30xf32>
    %185 = arith.addf %184, %183 : vector<2x30xf32>
    %186 = arith.divf %184, %185 : vector<2x30xf32>
    %187 = vector.extract_strided_slice %180 {offsets = [0, 30], sizes = [2, 10], strides = [1, 1]} : vector<2x40xf32> to vector<2x10xf32>
    %188 = math.tanh %187 : vector<2x10xf32>
    %189 = vector.extract_strided_slice %186 {offsets = [0, 0], sizes = [2, 10], strides = [1, 1]} : vector<2x30xf32> to vector<2x10xf32>
    %190 = vector.extract_strided_slice %186 {offsets = [0, 10], sizes = [2, 10], strides = [1, 1]} : vector<2x30xf32> to vector<2x10xf32>
    %191 = vector.extract_strided_slice %186 {offsets = [0, 20], sizes = [2, 10], strides = [1, 1]} : vector<2x30xf32> to vector<2x10xf32>
    %192 = arith.mulf %190, %177 : vector<2x10xf32>
    %193 = arith.mulf %189, %188 : vector<2x10xf32>
    %194 = arith.addf %192, %193 : vector<2x10xf32>
    %195 = math.tanh %194 : vector<2x10xf32>
    %196 = arith.mulf %191, %195 : vector<2x10xf32>
    %c0_47 = arith.constant 0 : index
    %c0_48 = arith.constant 0 : index
    %197 = vector.load %arg14[%c0_47, %c0_48] : memref<16x10xf32, #tpu.memory_space<vmem>>, vector<2x10xf32>
    tpu.vector_store %arg14[%c0_47, %c0_48], %196 {strides = array<i32>} : memref<16x10xf32, #tpu.memory_space<vmem>>, vector<2x10xf32>,
    %198 = vector.extract_strided_slice %175 {offsets = [2, 0], sizes = [2, 40], strides = [1, 1]} : vector<16x40xf32> to vector<2x40xf32>
    %cst_49 = arith.constant dense<0.000000e+00> : vector<2x40xf32>
    %199 = tpu.matmul %196, %170, %cst_49 {dimension_numbers = #tpu.dot_dimension_numbers<[1], [0], [0], [1], [0, 0, 1, 1], [], []>} : vector<2x10xf32>, vector<10x40xf32>, vector<2x40xf32> -> vector<2x40xf32>
    %200 = arith.addf %198, %199 : vector<2x40xf32>
    %201 = vector.extract_strided_slice %200 {offsets = [0, 0], sizes = [2, 30], strides = [1, 1]} : vector<2x40xf32> to vector<2x30xf32>
    %202 = arith.negf %201 : vector<2x30xf32>
    %203 = math.exp %202 : vector<2x30xf32>
    %cst_50 = arith.constant 1.000000e+00 : f32
    %204 = vector.broadcast %cst_50 : f32 to vector<2x30xf32>
    %205 = arith.addf %204, %203 : vector<2x30xf32>
    %206 = arith.divf %204, %205 : vector<2x30xf32>
    %207 = vector.extract_strided_slice %200 {offsets = [0, 30], sizes = [2, 10], strides = [1, 1]} : vector<2x40xf32> to vector<2x10xf32>
    %208 = math.tanh %207 : vector<2x10xf32>
    %209 = vector.extract_strided_slice %206 {offsets = [0, 0], sizes = [2, 10], strides = [1, 1]} : vector<2x30xf32> to vector<2x10xf32>
    %210 = vector.extract_strided_slice %206 {offsets = [0, 10], sizes = [2, 10], strides = [1, 1]} : vector<2x30xf32> to vector<2x10xf32>
    %211 = vector.extract_strided_slice %206 {offsets = [0, 20], sizes = [2, 10], strides = [1, 1]} : vector<2x30xf32> to vector<2x10xf32>
    %212 = arith.mulf %210, %194 : vector<2x10xf32>
    %213 = arith.mulf %209, %208 : vector<2x10xf32>
    %214 = arith.addf %212, %213 : vector<2x10xf32>
    %215 = math.tanh %214 : vector<2x10xf32>
    %216 = arith.mulf %211, %215 : vector<2x10xf32>
    %c2_51 = arith.constant 2 : index
    %c0_52 = arith.constant 0 : index
    %217 = vector.load %arg14[%c2_51, %c0_52] : memref<16x10xf32, #tpu.memory_space<vmem>>, vector<2x10xf32>
    tpu.vector_store %arg14[%c2_51, %c0_52], %216 {strides = array<i32>} : memref<16x10xf32, #tpu.memory_space<vmem>>, vector<2x10xf32>,
    %218 = vector.extract_strided_slice %175 {offsets = [4, 0], sizes = [2, 40], strides = [1, 1]} : vector<16x40xf32> to vector<2x40xf32>
    %cst_53 = arith.constant dense<0.000000e+00> : vector<2x40xf32>
    %219 = tpu.matmul %216, %170, %cst_53 {dimension_numbers = #tpu.dot_dimension_numbers<[1], [0], [0], [1], [0, 0, 1, 1], [], []>} : vector<2x10xf32>, vector<10x40xf32>, vector<2x40xf32> -> vector<2x40xf32>
    %220 = arith.addf %218, %219 : vector<2x40xf32>
    %221 = vector.extract_strided_slice %220 {offsets = [0, 0], sizes = [2, 30], strides = [1, 1]} : vector<2x40xf32> to vector<2x30xf32>
    %222 = arith.negf %221 : vector<2x30xf32>
    %223 = math.exp %222 : vector<2x30xf32>
    %cst_54 = arith.constant 1.000000e+00 : f32
    %224 = vector.broadcast %cst_54 : f32 to vector<2x30xf32>
    %225 = arith.addf %224, %223 : vector<2x30xf32>
    %226 = arith.divf %224, %225 : vector<2x30xf32>
    %227 = vector.extract_strided_slice %220 {offsets = [0, 30], sizes = [2, 10], strides = [1, 1]} : vector<2x40xf32> to vector<2x10xf32>
    %228 = math.tanh %227 : vector<2x10xf32>
    %229 = vector.extract_strided_slice %226 {offsets = [0, 0], sizes = [2, 10], strides = [1, 1]} : vector<2x30xf32> to vector<2x10xf32>
    %230 = vector.extract_strided_slice %226 {offsets = [0, 10], sizes = [2, 10], strides = [1, 1]} : vector<2x30xf32> to vector<2x10xf32>
    %231 = vector.extract_strided_slice %226 {offsets = [0, 20], sizes = [2, 10], strides = [1, 1]} : vector<2x30xf32> to vector<2x10xf32>
    %232 = arith.mulf %230, %214 : vector<2x10xf32>
    %233 = arith.mulf %229, %228 : vector<2x10xf32>
    %234 = arith.addf %232, %233 : vector<2x10xf32>
    %235 = math.tanh %234 : vector<2x10xf32>
    %236 = arith.mulf %231, %235 : vector<2x10xf32>
    %c4_55 = arith.constant 4 : index
    %c0_56 = arith.constant 0 : index
    %237 = vector.load %arg14[%c4_55, %c0_56] : memref<16x10xf32, #tpu.memory_space<vmem>>, vector<2x10xf32>
    tpu.vector_store %arg14[%c4_55, %c0_56], %236 {strides = array<i32>} : memref<16x10xf32, #tpu.memory_space<vmem>>, vector<2x10xf32>,
    %238 = vector.extract_strided_slice %175 {offsets = [6, 0], sizes = [2, 40], strides = [1, 1]} : vector<16x40xf32> to vector<2x40xf32>
    %cst_57 = arith.constant dense<0.000000e+00> : vector<2x40xf32>
    %239 = tpu.matmul %236, %170, %cst_57 {dimension_numbers = #tpu.dot_dimension_numbers<[1], [0], [0], [1], [0, 0, 1, 1], [], []>} : vector<2x10xf32>, vector<10x40xf32>, vector<2x40xf32> -> vector<2x40xf32>
    %240 = arith.addf %238, %239 : vector<2x40xf32>
    %241 = vector.extract_strided_slice %240 {offsets = [0, 0], sizes = [2, 30], strides = [1, 1]} : vector<2x40xf32> to vector<2x30xf32>
    %242 = arith.negf %241 : vector<2x30xf32>
    %243 = math.exp %242 : vector<2x30xf32>
    %cst_58 = arith.constant 1.000000e+00 : f32
    %244 = vector.broadcast %cst_58 : f32 to vector<2x30xf32>
    %245 = arith.addf %244, %243 : vector<2x30xf32>
    %246 = arith.divf %244, %245 : vector<2x30xf32>
    %247 = vector.extract_strided_slice %240 {offsets = [0, 30], sizes = [2, 10], strides = [1, 1]} : vector<2x40xf32> to vector<2x10xf32>
    %248 = math.tanh %247 : vector<2x10xf32>
    %249 = vector.extract_strided_slice %246 {offsets = [0, 0], sizes = [2, 10], strides = [1, 1]} : vector<2x30xf32> to vector<2x10xf32>
    %250 = vector.extract_strided_slice %246 {offsets = [0, 10], sizes = [2, 10], strides = [1, 1]} : vector<2x30xf32> to vector<2x10xf32>
    %251 = vector.extract_strided_slice %246 {offsets = [0, 20], sizes = [2, 10], strides = [1, 1]} : vector<2x30xf32> to vector<2x10xf32>
    %252 = arith.mulf %250, %234 : vector<2x10xf32>
    %253 = arith.mulf %249, %248 : vector<2x10xf32>
    %254 = arith.addf %252, %253 : vector<2x10xf32>
    %255 = math.tanh %254 : vector<2x10xf32>
    %256 = arith.mulf %251, %255 : vector<2x10xf32>
    %c6_59 = arith.constant 6 : index
    %c0_60 = arith.constant 0 : index
    %257 = vector.load %arg14[%c6_59, %c0_60] : memref<16x10xf32, #tpu.memory_space<vmem>>, vector<2x10xf32>
    tpu.vector_store %arg14[%c6_59, %c0_60], %256 {strides = array<i32>} : memref<16x10xf32, #tpu.memory_space<vmem>>, vector<2x10xf32>,
    %258 = vector.extract_strided_slice %175 {offsets = [8, 0], sizes = [2, 40], strides = [1, 1]} : vector<16x40xf32> to vector<2x40xf32>
    %cst_61 = arith.constant dense<0.000000e+00> : vector<2x40xf32>
    %259 = tpu.matmul %256, %170, %cst_61 {dimension_numbers = #tpu.dot_dimension_numbers<[1], [0], [0], [1], [0, 0, 1, 1], [], []>} : vector<2x10xf32>, vector<10x40xf32>, vector<2x40xf32> -> vector<2x40xf32>
    %260 = arith.addf %258, %259 : vector<2x40xf32>
    %261 = vector.extract_strided_slice %260 {offsets = [0, 0], sizes = [2, 30], strides = [1, 1]} : vector<2x40xf32> to vector<2x30xf32>
    %262 = arith.negf %261 : vector<2x30xf32>
    %263 = math.exp %262 : vector<2x30xf32>
    %cst_62 = arith.constant 1.000000e+00 : f32
    %264 = vector.broadcast %cst_62 : f32 to vector<2x30xf32>
    %265 = arith.addf %264, %263 : vector<2x30xf32>
    %266 = arith.divf %264, %265 : vector<2x30xf32>
    %267 = vector.extract_strided_slice %260 {offsets = [0, 30], sizes = [2, 10], strides = [1, 1]} : vector<2x40xf32> to vector<2x10xf32>
    %268 = math.tanh %267 : vector<2x10xf32>
    %269 = vector.extract_strided_slice %266 {offsets = [0, 0], sizes = [2, 10], strides = [1, 1]} : vector<2x30xf32> to vector<2x10xf32>
    %270 = vector.extract_strided_slice %266 {offsets = [0, 10], sizes = [2, 10], strides = [1, 1]} : vector<2x30xf32> to vector<2x10xf32>
    %271 = vector.extract_strided_slice %266 {offsets = [0, 20], sizes = [2, 10], strides = [1, 1]} : vector<2x30xf32> to vector<2x10xf32>
    %272 = arith.mulf %270, %254 : vector<2x10xf32>
    %273 = arith.mulf %269, %268 : vector<2x10xf32>
    %274 = arith.addf %272, %273 : vector<2x10xf32>
    %275 = math.tanh %274 : vector<2x10xf32>
    %276 = arith.mulf %271, %275 : vector<2x10xf32>
    %c8_63 = arith.constant 8 : index
    %c0_64 = arith.constant 0 : index
    %277 = vector.load %arg14[%c8_63, %c0_64] : memref<16x10xf32, #tpu.memory_space<vmem>>, vector<2x10xf32>
    tpu.vector_store %arg14[%c8_63, %c0_64], %276 {strides = array<i32>} : memref<16x10xf32, #tpu.memory_space<vmem>>, vector<2x10xf32>,
    %278 = vector.extract_strided_slice %175 {offsets = [10, 0], sizes = [2, 40], strides = [1, 1]} : vector<16x40xf32> to vector<2x40xf32>
    %cst_65 = arith.constant dense<0.000000e+00> : vector<2x40xf32>
    %279 = tpu.matmul %276, %170, %cst_65 {dimension_numbers = #tpu.dot_dimension_numbers<[1], [0], [0], [1], [0, 0, 1, 1], [], []>} : vector<2x10xf32>, vector<10x40xf32>, vector<2x40xf32> -> vector<2x40xf32>
    %280 = arith.addf %278, %279 : vector<2x40xf32>
    %281 = vector.extract_strided_slice %280 {offsets = [0, 0], sizes = [2, 30], strides = [1, 1]} : vector<2x40xf32> to vector<2x30xf32>
    %282 = arith.negf %281 : vector<2x30xf32>
    %283 = math.exp %282 : vector<2x30xf32>
    %cst_66 = arith.constant 1.000000e+00 : f32
    %284 = vector.broadcast %cst_66 : f32 to vector<2x30xf32>
    %285 = arith.addf %284, %283 : vector<2x30xf32>
    %286 = arith.divf %284, %285 : vector<2x30xf32>
    %287 = vector.extract_strided_slice %280 {offsets = [0, 30], sizes = [2, 10], strides = [1, 1]} : vector<2x40xf32> to vector<2x10xf32>
    %288 = math.tanh %287 : vector<2x10xf32>
    %289 = vector.extract_strided_slice %286 {offsets = [0, 0], sizes = [2, 10], strides = [1, 1]} : vector<2x30xf32> to vector<2x10xf32>
    %290 = vector.extract_strided_slice %286 {offsets = [0, 10], sizes = [2, 10], strides = [1, 1]} : vector<2x30xf32> to vector<2x10xf32>
    %291 = vector.extract_strided_slice %286 {offsets = [0, 20], sizes = [2, 10], strides = [1, 1]} : vector<2x30xf32> to vector<2x10xf32>
    %292 = arith.mulf %290, %274 : vector<2x10xf32>
    %293 = arith.mulf %289, %288 : vector<2x10xf32>
    %294 = arith.addf %292, %293 : vector<2x10xf32>
    %295 = math.tanh %294 : vector<2x10xf32>
    %296 = arith.mulf %291, %295 : vector<2x10xf32>
    %c10_67 = arith.constant 10 : index
    %c0_68 = arith.constant 0 : index
    %297 = vector.load %arg14[%c10_67, %c0_68] : memref<16x10xf32, #tpu.memory_space<vmem>>, vector<2x10xf32>
    tpu.vector_store %arg14[%c10_67, %c0_68], %296 {strides = array<i32>} : memref<16x10xf32, #tpu.memory_space<vmem>>, vector<2x10xf32>,
    %298 = vector.extract_strided_slice %175 {offsets = [12, 0], sizes = [2, 40], strides = [1, 1]} : vector<16x40xf32> to vector<2x40xf32>
    %cst_69 = arith.constant dense<0.000000e+00> : vector<2x40xf32>
    %299 = tpu.matmul %296, %170, %cst_69 {dimension_numbers = #tpu.dot_dimension_numbers<[1], [0], [0], [1], [0, 0, 1, 1], [], []>} : vector<2x10xf32>, vector<10x40xf32>, vector<2x40xf32> -> vector<2x40xf32>
    %300 = arith.addf %298, %299 : vector<2x40xf32>
    %301 = vector.extract_strided_slice %300 {offsets = [0, 0], sizes = [2, 30], strides = [1, 1]} : vector<2x40xf32> to vector<2x30xf32>
    %302 = arith.negf %301 : vector<2x30xf32>
    %303 = math.exp %302 : vector<2x30xf32>
    %cst_70 = arith.constant 1.000000e+00 : f32
    %304 = vector.broadcast %cst_70 : f32 to vector<2x30xf32>
    %305 = arith.addf %304, %303 : vector<2x30xf32>
    %306 = arith.divf %304, %305 : vector<2x30xf32>
    %307 = vector.extract_strided_slice %300 {offsets = [0, 30], sizes = [2, 10], strides = [1, 1]} : vector<2x40xf32> to vector<2x10xf32>
    %308 = math.tanh %307 : vector<2x10xf32>
    %309 = vector.extract_strided_slice %306 {offsets = [0, 0], sizes = [2, 10], strides = [1, 1]} : vector<2x30xf32> to vector<2x10xf32>
    %310 = vector.extract_strided_slice %306 {offsets = [0, 10], sizes = [2, 10], strides = [1, 1]} : vector<2x30xf32> to vector<2x10xf32>
    %311 = vector.extract_strided_slice %306 {offsets = [0, 20], sizes = [2, 10], strides = [1, 1]} : vector<2x30xf32> to vector<2x10xf32>
    %312 = arith.mulf %310, %294 : vector<2x10xf32>
    %313 = arith.mulf %309, %308 : vector<2x10xf32>
    %314 = arith.addf %312, %313 : vector<2x10xf32>
    %315 = math.tanh %314 : vector<2x10xf32>
    %316 = arith.mulf %311, %315 : vector<2x10xf32>
    %c12_71 = arith.constant 12 : index
    %c0_72 = arith.constant 0 : index
    %317 = vector.load %arg14[%c12_71, %c0_72] : memref<16x10xf32, #tpu.memory_space<vmem>>, vector<2x10xf32>
    tpu.vector_store %arg14[%c12_71, %c0_72], %316 {strides = array<i32>} : memref<16x10xf32, #tpu.memory_space<vmem>>, vector<2x10xf32>,
    %318 = vector.extract_strided_slice %175 {offsets = [14, 0], sizes = [2, 40], strides = [1, 1]} : vector<16x40xf32> to vector<2x40xf32>
    %cst_73 = arith.constant dense<0.000000e+00> : vector<2x40xf32>
    %319 = tpu.matmul %316, %170, %cst_73 {dimension_numbers = #tpu.dot_dimension_numbers<[1], [0], [0], [1], [0, 0, 1, 1], [], []>} : vector<2x10xf32>, vector<10x40xf32>, vector<2x40xf32> -> vector<2x40xf32>
    %320 = arith.addf %318, %319 : vector<2x40xf32>
    %321 = vector.extract_strided_slice %320 {offsets = [0, 0], sizes = [2, 30], strides = [1, 1]} : vector<2x40xf32> to vector<2x30xf32>
    %322 = arith.negf %321 : vector<2x30xf32>
    %323 = math.exp %322 : vector<2x30xf32>
    %cst_74 = arith.constant 1.000000e+00 : f32
    %324 = vector.broadcast %cst_74 : f32 to vector<2x30xf32>
    %325 = arith.addf %324, %323 : vector<2x30xf32>
    %326 = arith.divf %324, %325 : vector<2x30xf32>
    %327 = vector.extract_strided_slice %320 {offsets = [0, 30], sizes = [2, 10], strides = [1, 1]} : vector<2x40xf32> to vector<2x10xf32>
    %328 = math.tanh %327 : vector<2x10xf32>
    %329 = vector.extract_strided_slice %326 {offsets = [0, 0], sizes = [2, 10], strides = [1, 1]} : vector<2x30xf32> to vector<2x10xf32>
    %330 = vector.extract_strided_slice %326 {offsets = [0, 10], sizes = [2, 10], strides = [1, 1]} : vector<2x30xf32> to vector<2x10xf32>
    %331 = vector.extract_strided_slice %326 {offsets = [0, 20], sizes = [2, 10], strides = [1, 1]} : vector<2x30xf32> to vector<2x10xf32>
    %332 = arith.mulf %330, %314 : vector<2x10xf32>
    %333 = arith.mulf %329, %328 : vector<2x10xf32>
    %334 = arith.addf %332, %333 : vector<2x10xf32>
    %335 = math.tanh %334 : vector<2x10xf32>
    %336 = arith.mulf %331, %335 : vector<2x10xf32>
    %c14_75 = arith.constant 14 : index
    %c0_76 = arith.constant 0 : index
    %337 = vector.load %arg14[%c14_75, %c0_76] : memref<16x10xf32, #tpu.memory_space<vmem>>, vector<2x10xf32>
    tpu.vector_store %arg14[%c14_75, %c0_76], %336 {strides = array<i32>} : memref<16x10xf32, #tpu.memory_space<vmem>>, vector<2x10xf32>,
    %c0_77 = arith.constant 0 : index
    %c0_78 = arith.constant 0 : index
    %338 = vector.load %arg14[%c0_77, %c0_78] : memref<16x10xf32, #tpu.memory_space<vmem>>, vector<16x10xf32>
    %c0_79 = arith.constant 0 : index
    %c0_80 = arith.constant 0 : index
    %339 = vector.load %arg8[%c0_79, %c0_80] : memref<10x40xf32, #tpu.memory_space<vmem>>, vector<10x40xf32>
    %c0_81 = arith.constant 0 : index
    %c0_82 = arith.constant 0 : index
    %340 = vector.load %arg7[%c0_81, %c0_82] : memref<10x40xf32, #tpu.memory_space<vmem>>, vector<10x40xf32>
    %cst_83 = arith.constant dense<0.000000e+00> : vector<16x40xf32>
    %341 = tpu.matmul %338, %340, %cst_83 {dimension_numbers = #tpu.dot_dimension_numbers<[1], [0], [0], [1], [0, 0, 1, 1], [], []>} : vector<16x10xf32>, vector<10x40xf32>, vector<16x40xf32> -> vector<16x40xf32>
    %c0_84 = arith.constant 0 : index
    %c0_85 = arith.constant 0 : index
    %342 = vector.load %arg9[%c0_84, %c0_85] : memref<1x40xf32, #tpu.memory_space<vmem>>, vector<1x40xf32>
    %343 = vector.broadcast %342 : vector<1x40xf32> to vector<16x40xf32>
    %344 = arith.addf %341, %343 : vector<16x40xf32>
    %cst_86 = arith.constant 0.000000e+00 : f32
    %345 = vector.broadcast %cst_86 : f32 to vector<2x10xf32>
    %cst_87 = arith.constant 0.000000e+00 : f32
    %346 = vector.broadcast %cst_87 : f32 to vector<2x10xf32>
    %347 = vector.extract_strided_slice %344 {offsets = [0, 0], sizes = [2, 40], strides = [1, 1]} : vector<16x40xf32> to vector<2x40xf32>
    %cst_88 = arith.constant dense<0.000000e+00> : vector<2x40xf32>
    %348 = tpu.matmul %345, %339, %cst_88 {dimension_numbers = #tpu.dot_dimension_numbers<[1], [0], [0], [1], [0, 0, 1, 1], [], []>} : vector<2x10xf32>, vector<10x40xf32>, vector<2x40xf32> -> vector<2x40xf32>
    %349 = arith.addf %347, %348 : vector<2x40xf32>
    %350 = vector.extract_strided_slice %349 {offsets = [0, 0], sizes = [2, 30], strides = [1, 1]} : vector<2x40xf32> to vector<2x30xf32>
    %351 = arith.negf %350 : vector<2x30xf32>
    %352 = math.exp %351 : vector<2x30xf32>
    %cst_89 = arith.constant 1.000000e+00 : f32
    %353 = vector.broadcast %cst_89 : f32 to vector<2x30xf32>
    %354 = arith.addf %353, %352 : vector<2x30xf32>
    %355 = arith.divf %353, %354 : vector<2x30xf32>
    %356 = vector.extract_strided_slice %349 {offsets = [0, 30], sizes = [2, 10], strides = [1, 1]} : vector<2x40xf32> to vector<2x10xf32>
    %357 = math.tanh %356 : vector<2x10xf32>
    %358 = vector.extract_strided_slice %355 {offsets = [0, 0], sizes = [2, 10], strides = [1, 1]} : vector<2x30xf32> to vector<2x10xf32>
    %359 = vector.extract_strided_slice %355 {offsets = [0, 10], sizes = [2, 10], strides = [1, 1]} : vector<2x30xf32> to vector<2x10xf32>
    %360 = vector.extract_strided_slice %355 {offsets = [0, 20], sizes = [2, 10], strides = [1, 1]} : vector<2x30xf32> to vector<2x10xf32>
    %361 = arith.mulf %359, %346 : vector<2x10xf32>
    %362 = arith.mulf %358, %357 : vector<2x10xf32>
    %363 = arith.addf %361, %362 : vector<2x10xf32>
    %364 = math.tanh %363 : vector<2x10xf32>
    %365 = arith.mulf %360, %364 : vector<2x10xf32>
    %c0_90 = arith.constant 0 : index
    %c0_91 = arith.constant 0 : index
    %366 = vector.load %arg13[%c0_90, %c0_91] : memref<16x10xf32, #tpu.memory_space<vmem>>, vector<2x10xf32>
    tpu.vector_store %arg13[%c0_90, %c0_91], %365 {strides = array<i32>} : memref<16x10xf32, #tpu.memory_space<vmem>>, vector<2x10xf32>,
    %367 = vector.extract_strided_slice %344 {offsets = [2, 0], sizes = [2, 40], strides = [1, 1]} : vector<16x40xf32> to vector<2x40xf32>
    %cst_92 = arith.constant dense<0.000000e+00> : vector<2x40xf32>
    %368 = tpu.matmul %365, %339, %cst_92 {dimension_numbers = #tpu.dot_dimension_numbers<[1], [0], [0], [1], [0, 0, 1, 1], [], []>} : vector<2x10xf32>, vector<10x40xf32>, vector<2x40xf32> -> vector<2x40xf32>
    %369 = arith.addf %367, %368 : vector<2x40xf32>
    %370 = vector.extract_strided_slice %369 {offsets = [0, 0], sizes = [2, 30], strides = [1, 1]} : vector<2x40xf32> to vector<2x30xf32>
    %371 = arith.negf %370 : vector<2x30xf32>
    %372 = math.exp %371 : vector<2x30xf32>
    %cst_93 = arith.constant 1.000000e+00 : f32
    %373 = vector.broadcast %cst_93 : f32 to vector<2x30xf32>
    %374 = arith.addf %373, %372 : vector<2x30xf32>
    %375 = arith.divf %373, %374 : vector<2x30xf32>
    %376 = vector.extract_strided_slice %369 {offsets = [0, 30], sizes = [2, 10], strides = [1, 1]} : vector<2x40xf32> to vector<2x10xf32>
    %377 = math.tanh %376 : vector<2x10xf32>
    %378 = vector.extract_strided_slice %375 {offsets = [0, 0], sizes = [2, 10], strides = [1, 1]} : vector<2x30xf32> to vector<2x10xf32>
    %379 = vector.extract_strided_slice %375 {offsets = [0, 10], sizes = [2, 10], strides = [1, 1]} : vector<2x30xf32> to vector<2x10xf32>
    %380 = vector.extract_strided_slice %375 {offsets = [0, 20], sizes = [2, 10], strides = [1, 1]} : vector<2x30xf32> to vector<2x10xf32>
    %381 = arith.mulf %379, %363 : vector<2x10xf32>
    %382 = arith.mulf %378, %377 : vector<2x10xf32>
    %383 = arith.addf %381, %382 : vector<2x10xf32>
    %384 = math.tanh %383 : vector<2x10xf32>
    %385 = arith.mulf %380, %384 : vector<2x10xf32>
    %c2_94 = arith.constant 2 : index
    %c0_95 = arith.constant 0 : index
    %386 = vector.load %arg13[%c2_94, %c0_95] : memref<16x10xf32, #tpu.memory_space<vmem>>, vector<2x10xf32>
    tpu.vector_store %arg13[%c2_94, %c0_95], %385 {strides = array<i32>} : memref<16x10xf32, #tpu.memory_space<vmem>>, vector<2x10xf32>,
    %387 = vector.extract_strided_slice %344 {offsets = [4, 0], sizes = [2, 40], strides = [1, 1]} : vector<16x40xf32> to vector<2x40xf32>
    %cst_96 = arith.constant dense<0.000000e+00> : vector<2x40xf32>
    %388 = tpu.matmul %385, %339, %cst_96 {dimension_numbers = #tpu.dot_dimension_numbers<[1], [0], [0], [1], [0, 0, 1, 1], [], []>} : vector<2x10xf32>, vector<10x40xf32>, vector<2x40xf32> -> vector<2x40xf32>
    %389 = arith.addf %387, %388 : vector<2x40xf32>
    %390 = vector.extract_strided_slice %389 {offsets = [0, 0], sizes = [2, 30], strides = [1, 1]} : vector<2x40xf32> to vector<2x30xf32>
    %391 = arith.negf %390 : vector<2x30xf32>
    %392 = math.exp %391 : vector<2x30xf32>
    %cst_97 = arith.constant 1.000000e+00 : f32
    %393 = vector.broadcast %cst_97 : f32 to vector<2x30xf32>
    %394 = arith.addf %393, %392 : vector<2x30xf32>
    %395 = arith.divf %393, %394 : vector<2x30xf32>
    %396 = vector.extract_strided_slice %389 {offsets = [0, 30], sizes = [2, 10], strides = [1, 1]} : vector<2x40xf32> to vector<2x10xf32>
    %397 = math.tanh %396 : vector<2x10xf32>
    %398 = vector.extract_strided_slice %395 {offsets = [0, 0], sizes = [2, 10], strides = [1, 1]} : vector<2x30xf32> to vector<2x10xf32>
    %399 = vector.extract_strided_slice %395 {offsets = [0, 10], sizes = [2, 10], strides = [1, 1]} : vector<2x30xf32> to vector<2x10xf32>
    %400 = vector.extract_strided_slice %395 {offsets = [0, 20], sizes = [2, 10], strides = [1, 1]} : vector<2x30xf32> to vector<2x10xf32>
    %401 = arith.mulf %399, %383 : vector<2x10xf32>
    %402 = arith.mulf %398, %397 : vector<2x10xf32>
    %403 = arith.addf %401, %402 : vector<2x10xf32>
    %404 = math.tanh %403 : vector<2x10xf32>
    %405 = arith.mulf %400, %404 : vector<2x10xf32>
    %c4_98 = arith.constant 4 : index
    %c0_99 = arith.constant 0 : index
    %406 = vector.load %arg13[%c4_98, %c0_99] : memref<16x10xf32, #tpu.memory_space<vmem>>, vector<2x10xf32>
    tpu.vector_store %arg13[%c4_98, %c0_99], %405 {strides = array<i32>} : memref<16x10xf32, #tpu.memory_space<vmem>>, vector<2x10xf32>,
    %407 = vector.extract_strided_slice %344 {offsets = [6, 0], sizes = [2, 40], strides = [1, 1]} : vector<16x40xf32> to vector<2x40xf32>
    %cst_100 = arith.constant dense<0.000000e+00> : vector<2x40xf32>
    %408 = tpu.matmul %405, %339, %cst_100 {dimension_numbers = #tpu.dot_dimension_numbers<[1], [0], [0], [1], [0, 0, 1, 1], [], []>} : vector<2x10xf32>, vector<10x40xf32>, vector<2x40xf32> -> vector<2x40xf32>
    %409 = arith.addf %407, %408 : vector<2x40xf32>
    %410 = vector.extract_strided_slice %409 {offsets = [0, 0], sizes = [2, 30], strides = [1, 1]} : vector<2x40xf32> to vector<2x30xf32>
    %411 = arith.negf %410 : vector<2x30xf32>
    %412 = math.exp %411 : vector<2x30xf32>
    %cst_101 = arith.constant 1.000000e+00 : f32
    %413 = vector.broadcast %cst_101 : f32 to vector<2x30xf32>
    %414 = arith.addf %413, %412 : vector<2x30xf32>
    %415 = arith.divf %413, %414 : vector<2x30xf32>
    %416 = vector.extract_strided_slice %409 {offsets = [0, 30], sizes = [2, 10], strides = [1, 1]} : vector<2x40xf32> to vector<2x10xf32>
    %417 = math.tanh %416 : vector<2x10xf32>
    %418 = vector.extract_strided_slice %415 {offsets = [0, 0], sizes = [2, 10], strides = [1, 1]} : vector<2x30xf32> to vector<2x10xf32>
    %419 = vector.extract_strided_slice %415 {offsets = [0, 10], sizes = [2, 10], strides = [1, 1]} : vector<2x30xf32> to vector<2x10xf32>
    %420 = vector.extract_strided_slice %415 {offsets = [0, 20], sizes = [2, 10], strides = [1, 1]} : vector<2x30xf32> to vector<2x10xf32>
    %421 = arith.mulf %419, %403 : vector<2x10xf32>
    %422 = arith.mulf %418, %417 : vector<2x10xf32>
    %423 = arith.addf %421, %422 : vector<2x10xf32>
    %424 = math.tanh %423 : vector<2x10xf32>
    %425 = arith.mulf %420, %424 : vector<2x10xf32>
    %c6_102 = arith.constant 6 : index
    %c0_103 = arith.constant 0 : index
    %426 = vector.load %arg13[%c6_102, %c0_103] : memref<16x10xf32, #tpu.memory_space<vmem>>, vector<2x10xf32>
    tpu.vector_store %arg13[%c6_102, %c0_103], %425 {strides = array<i32>} : memref<16x10xf32, #tpu.memory_space<vmem>>, vector<2x10xf32>,
    %427 = vector.extract_strided_slice %344 {offsets = [8, 0], sizes = [2, 40], strides = [1, 1]} : vector<16x40xf32> to vector<2x40xf32>
    %cst_104 = arith.constant dense<0.000000e+00> : vector<2x40xf32>
    %428 = tpu.matmul %425, %339, %cst_104 {dimension_numbers = #tpu.dot_dimension_numbers<[1], [0], [0], [1], [0, 0, 1, 1], [], []>} : vector<2x10xf32>, vector<10x40xf32>, vector<2x40xf32> -> vector<2x40xf32>
    %429 = arith.addf %427, %428 : vector<2x40xf32>
    %430 = vector.extract_strided_slice %429 {offsets = [0, 0], sizes = [2, 30], strides = [1, 1]} : vector<2x40xf32> to vector<2x30xf32>
    %431 = arith.negf %430 : vector<2x30xf32>
    %432 = math.exp %431 : vector<2x30xf32>
    %cst_105 = arith.constant 1.000000e+00 : f32
    %433 = vector.broadcast %cst_105 : f32 to vector<2x30xf32>
    %434 = arith.addf %433, %432 : vector<2x30xf32>
    %435 = arith.divf %433, %434 : vector<2x30xf32>
    %436 = vector.extract_strided_slice %429 {offsets = [0, 30], sizes = [2, 10], strides = [1, 1]} : vector<2x40xf32> to vector<2x10xf32>
    %437 = math.tanh %436 : vector<2x10xf32>
    %438 = vector.extract_strided_slice %435 {offsets = [0, 0], sizes = [2, 10], strides = [1, 1]} : vector<2x30xf32> to vector<2x10xf32>
    %439 = vector.extract_strided_slice %435 {offsets = [0, 10], sizes = [2, 10], strides = [1, 1]} : vector<2x30xf32> to vector<2x10xf32>
    %440 = vector.extract_strided_slice %435 {offsets = [0, 20], sizes = [2, 10], strides = [1, 1]} : vector<2x30xf32> to vector<2x10xf32>
    %441 = arith.mulf %439, %423 : vector<2x10xf32>
    %442 = arith.mulf %438, %437 : vector<2x10xf32>
    %443 = arith.addf %441, %442 : vector<2x10xf32>
    %444 = math.tanh %443 : vector<2x10xf32>
    %445 = arith.mulf %440, %444 : vector<2x10xf32>
    %c8_106 = arith.constant 8 : index
    %c0_107 = arith.constant 0 : index
    %446 = vector.load %arg13[%c8_106, %c0_107] : memref<16x10xf32, #tpu.memory_space<vmem>>, vector<2x10xf32>
    tpu.vector_store %arg13[%c8_106, %c0_107], %445 {strides = array<i32>} : memref<16x10xf32, #tpu.memory_space<vmem>>, vector<2x10xf32>,
    %447 = vector.extract_strided_slice %344 {offsets = [10, 0], sizes = [2, 40], strides = [1, 1]} : vector<16x40xf32> to vector<2x40xf32>
    %cst_108 = arith.constant dense<0.000000e+00> : vector<2x40xf32>
    %448 = tpu.matmul %445, %339, %cst_108 {dimension_numbers = #tpu.dot_dimension_numbers<[1], [0], [0], [1], [0, 0, 1, 1], [], []>} : vector<2x10xf32>, vector<10x40xf32>, vector<2x40xf32> -> vector<2x40xf32>
    %449 = arith.addf %447, %448 : vector<2x40xf32>
    %450 = vector.extract_strided_slice %449 {offsets = [0, 0], sizes = [2, 30], strides = [1, 1]} : vector<2x40xf32> to vector<2x30xf32>
    %451 = arith.negf %450 : vector<2x30xf32>
    %452 = math.exp %451 : vector<2x30xf32>
    %cst_109 = arith.constant 1.000000e+00 : f32
    %453 = vector.broadcast %cst_109 : f32 to vector<2x30xf32>
    %454 = arith.addf %453, %452 : vector<2x30xf32>
    %455 = arith.divf %453, %454 : vector<2x30xf32>
    %456 = vector.extract_strided_slice %449 {offsets = [0, 30], sizes = [2, 10], strides = [1, 1]} : vector<2x40xf32> to vector<2x10xf32>
    %457 = math.tanh %456 : vector<2x10xf32>
    %458 = vector.extract_strided_slice %455 {offsets = [0, 0], sizes = [2, 10], strides = [1, 1]} : vector<2x30xf32> to vector<2x10xf32>
    %459 = vector.extract_strided_slice %455 {offsets = [0, 10], sizes = [2, 10], strides = [1, 1]} : vector<2x30xf32> to vector<2x10xf32>
    %460 = vector.extract_strided_slice %455 {offsets = [0, 20], sizes = [2, 10], strides = [1, 1]} : vector<2x30xf32> to vector<2x10xf32>
    %461 = arith.mulf %459, %443 : vector<2x10xf32>
    %462 = arith.mulf %458, %457 : vector<2x10xf32>
    %463 = arith.addf %461, %462 : vector<2x10xf32>
    %464 = math.tanh %463 : vector<2x10xf32>
    %465 = arith.mulf %460, %464 : vector<2x10xf32>
    %c10_110 = arith.constant 10 : index
    %c0_111 = arith.constant 0 : index
    %466 = vector.load %arg13[%c10_110, %c0_111] : memref<16x10xf32, #tpu.memory_space<vmem>>, vector<2x10xf32>
    tpu.vector_store %arg13[%c10_110, %c0_111], %465 {strides = array<i32>} : memref<16x10xf32, #tpu.memory_space<vmem>>, vector<2x10xf32>,
    %467 = vector.extract_strided_slice %344 {offsets = [12, 0], sizes = [2, 40], strides = [1, 1]} : vector<16x40xf32> to vector<2x40xf32>
    %cst_112 = arith.constant dense<0.000000e+00> : vector<2x40xf32>
    %468 = tpu.matmul %465, %339, %cst_112 {dimension_numbers = #tpu.dot_dimension_numbers<[1], [0], [0], [1], [0, 0, 1, 1], [], []>} : vector<2x10xf32>, vector<10x40xf32>, vector<2x40xf32> -> vector<2x40xf32>
    %469 = arith.addf %467, %468 : vector<2x40xf32>
    %470 = vector.extract_strided_slice %469 {offsets = [0, 0], sizes = [2, 30], strides = [1, 1]} : vector<2x40xf32> to vector<2x30xf32>
    %471 = arith.negf %470 : vector<2x30xf32>
    %472 = math.exp %471 : vector<2x30xf32>
    %cst_113 = arith.constant 1.000000e+00 : f32
    %473 = vector.broadcast %cst_113 : f32 to vector<2x30xf32>
    %474 = arith.addf %473, %472 : vector<2x30xf32>
    %475 = arith.divf %473, %474 : vector<2x30xf32>
    %476 = vector.extract_strided_slice %469 {offsets = [0, 30], sizes = [2, 10], strides = [1, 1]} : vector<2x40xf32> to vector<2x10xf32>
    %477 = math.tanh %476 : vector<2x10xf32>
    %478 = vector.extract_strided_slice %475 {offsets = [0, 0], sizes = [2, 10], strides = [1, 1]} : vector<2x30xf32> to vector<2x10xf32>
    %479 = vector.extract_strided_slice %475 {offsets = [0, 10], sizes = [2, 10], strides = [1, 1]} : vector<2x30xf32> to vector<2x10xf32>
    %480 = vector.extract_strided_slice %475 {offsets = [0, 20], sizes = [2, 10], strides = [1, 1]} : vector<2x30xf32> to vector<2x10xf32>
    %481 = arith.mulf %479, %463 : vector<2x10xf32>
    %482 = arith.mulf %478, %477 : vector<2x10xf32>
    %483 = arith.addf %481, %482 : vector<2x10xf32>
    %484 = math.tanh %483 : vector<2x10xf32>
    %485 = arith.mulf %480, %484 : vector<2x10xf32>
    %c12_114 = arith.constant 12 : index
    %c0_115 = arith.constant 0 : index
    %486 = vector.load %arg13[%c12_114, %c0_115] : memref<16x10xf32, #tpu.memory_space<vmem>>, vector<2x10xf32>
    tpu.vector_store %arg13[%c12_114, %c0_115], %485 {strides = array<i32>} : memref<16x10xf32, #tpu.memory_space<vmem>>, vector<2x10xf32>,
    %487 = vector.extract_strided_slice %344 {offsets = [14, 0], sizes = [2, 40], strides = [1, 1]} : vector<16x40xf32> to vector<2x40xf32>
    %cst_116 = arith.constant dense<0.000000e+00> : vector<2x40xf32>
    %488 = tpu.matmul %485, %339, %cst_116 {dimension_numbers = #tpu.dot_dimension_numbers<[1], [0], [0], [1], [0, 0, 1, 1], [], []>} : vector<2x10xf32>, vector<10x40xf32>, vector<2x40xf32> -> vector<2x40xf32>
    %489 = arith.addf %487, %488 : vector<2x40xf32>
    %490 = vector.extract_strided_slice %489 {offsets = [0, 0], sizes = [2, 30], strides = [1, 1]} : vector<2x40xf32> to vector<2x30xf32>
    %491 = arith.negf %490 : vector<2x30xf32>
    %492 = math.exp %491 : vector<2x30xf32>
    %cst_117 = arith.constant 1.000000e+00 : f32
    %493 = vector.broadcast %cst_117 : f32 to vector<2x30xf32>
    %494 = arith.addf %493, %492 : vector<2x30xf32>
    %495 = arith.divf %493, %494 : vector<2x30xf32>
    %496 = vector.extract_strided_slice %489 {offsets = [0, 30], sizes = [2, 10], strides = [1, 1]} : vector<2x40xf32> to vector<2x10xf32>
    %497 = math.tanh %496 : vector<2x10xf32>
    %498 = vector.extract_strided_slice %495 {offsets = [0, 0], sizes = [2, 10], strides = [1, 1]} : vector<2x30xf32> to vector<2x10xf32>
    %499 = vector.extract_strided_slice %495 {offsets = [0, 10], sizes = [2, 10], strides = [1, 1]} : vector<2x30xf32> to vector<2x10xf32>
    %500 = vector.extract_strided_slice %495 {offsets = [0, 20], sizes = [2, 10], strides = [1, 1]} : vector<2x30xf32> to vector<2x10xf32>
    %501 = arith.mulf %499, %483 : vector<2x10xf32>
    %502 = arith.mulf %498, %497 : vector<2x10xf32>
    %503 = arith.addf %501, %502 : vector<2x10xf32>
    %504 = math.tanh %503 : vector<2x10xf32>
    %505 = arith.mulf %500, %504 : vector<2x10xf32>
    %c14_118 = arith.constant 14 : index
    %c0_119 = arith.constant 0 : index
    %506 = vector.load %arg13[%c14_118, %c0_119] : memref<16x10xf32, #tpu.memory_space<vmem>>, vector<2x10xf32>
    tpu.vector_store %arg13[%c14_118, %c0_119], %505 {strides = array<i32>} : memref<16x10xf32, #tpu.memory_space<vmem>>, vector<2x10xf32>,
    %c0_120 = arith.constant 0 : index
    %c0_121 = arith.constant 0 : index
    %507 = vector.load %arg13[%c0_120, %c0_121] : memref<16x10xf32, #tpu.memory_space<vmem>>, vector<16x10xf32>
    %c0_122 = arith.constant 0 : index
    %c0_123 = arith.constant 0 : index
    %508 = vector.load %arg10[%c0_122, %c0_123] : memref<10x1xf32, #tpu.memory_space<vmem>>, vector<10x1xf32>
    %cst_124 = arith.constant dense<0.000000e+00> : vector<16x1xf32>
    %509 = tpu.matmul %507, %508, %cst_124 {dimension_numbers = #tpu.dot_dimension_numbers<[1], [0], [0], [1], [0, 0, 1, 1], [], []>} : vector<16x10xf32>, vector<10x1xf32>, vector<16x1xf32> -> vector<16x1xf32>
    %c0_125 = arith.constant 0 : index
    %c0_126 = arith.constant 0 : index
    %510 = vector.load %arg11[%c0_125, %c0_126] : memref<1x1xf32, #tpu.memory_space<vmem>>, vector<1x1xf32>
    %511 = vector.broadcast %510 : vector<1x1xf32> to vector<16x1xf32>
    %512 = arith.addf %509, %511 : vector<16x1xf32>
    %c0_127 = arith.constant 0 : index
    %c0_128 = arith.constant 0 : index
    %513 = vector.load %arg12[%c0_127, %c0_128] : memref<16x1xf32, #tpu.memory_space<vmem>>, vector<16x1xf32>
    tpu.vector_store %arg12[%c0_127, %c0_128], %512 {strides = array<i32>} : memref<16x1xf32, #tpu.memory_space<vmem>>, vector<16x1xf32>,
    return
  }
}

</mosaic_0001>

<bundles_post_ra>
// kernel: lstm_forward.1
= control target key start
LH: loop header
LB: loop body
LE: loop exit
PB: predicated region body
PF: predicated region fallthrough
CT: control target
= control target key end

     0   :  { %s3020_s0 = inlined_call_operand.vmem [shape: f32[16,15], index: 0, kind: input, shape index: {}]   ;;  %s3021_s1 = inlined_call_operand.hbm [shape: f32[15,40], index: 1, kind: input, shape index: {}]   ;;  %s3022_s2 = inlined_call_operand.hbm [shape: f32[10,40], index: 2, kind: input, shape index: {}]   ;;  %s3023_s3 = inlined_call_operand.vmem [shape: f32[1,40], index: 3, kind: input, shape index: {}]   ;;  %s3024_s4 = inlined_call_operand.hbm [shape: f32[10,40], index: 4, kind: input, shape index: {}]   ;;  %s3025_s5 = inlined_call_operand.hbm [shape: f32[10,40], index: 5, kind: input, shape index: {}]   ;;  %s3026_s6 = inlined_call_operand.vmem [shape: f32[1,40], index: 6, kind: input, shape index: {}]   ;;  %s3027_s7 = inlined_call_operand.hbm [shape: f32[10,40], index: 7, kind: input, shape index: {}]   ;;  %s3028_s8 = inlined_call_operand.hbm [shape: f32[10,40], index: 8, kind: input, shape index: {}]   ;;  %s3029_s9 = inlined_call_operand.vmem [shape: f32[1,40], index: 9, kind: input, shape index: {}]   ;;  %s3030_s10 = inlined_call_operand.vmem [shape: f32[10,1], index: 10, kind: input, shape index: {}]   ;;  %s3031_s11 = inlined_call_operand.<no memory space> [shape: f32[1,1], index: 11, kind: input, shape index: {}]   ;;  %s3032_s12 = inlined_call_operand.vmem [shape: f32[16,1], index: 12, kind: output, shape index: {}]  }
   0x1   :  { %v17_v0 = vstv %s3031_s11 }
   0x2   :  { %18 = vst [vmem:[#allocation4] sm:$0x1] %v17_v0 }
   0x3   :  { %19 = vsyncpa [#allocation6], 0 }
   0x4   :  { %20 = vsyncpa [#allocation8], 0 }
   0x5   :  { %21 = vsyncpa [#allocation11], 0 }
   0x6   :  { %22 = vsyncpa [#allocation14], 0  ;;  %s42_s25 = sshll.u32 %s3022_s2, 4  ;;  %s2491_s26 = smov [#allocation7]   ;;  %s43_s25 = int_to_ptr.hbm [resolvable:$true] %s42_s25 }
   0x7   :  { %s44_s27 = sshll.u32 %s2491_s26, 4  ;;  %s70_s30 = sshll.u32 %s3025_s5, 4  ;;  %s45_s27 = int_to_ptr.vmem [resolvable:$true] %s44_s27  ;;  %s71_s30 = int_to_ptr.hbm [resolvable:$true] %s70_s30 }
   0x8   :  { %s2492_s13 = smov 128   ;;  %s2493_s14 = smov 8  }
   0x9   :  { %50 = dma.hbm_to_vmem [thread:$0]  %s43_s25, 256, %s45_s27, [#allocation8], %s2492_s13, %s2492_s13, %s2493_s14  }
   0xa   :  { %s2494_s11 = smov [#allocation10]   ;;  %s29_s2 = sshll.u32 %s3021_s1, 4  ;;  %s30_s2 = int_to_ptr.hbm [resolvable:$true] %s29_s2 }
   0xb   :  { %s72_s15 = sshll.u32 %s2494_s11, 4  ;;  %s57_s19 = sshll.u32 %s3024_s4, 4  ;;  %s73_s15 = int_to_ptr.vmem [resolvable:$true] %s72_s15  ;;  %s58_s19 = int_to_ptr.hbm [resolvable:$true] %s57_s19 }
   0xc   :  { %78 = dma.hbm_to_vmem [thread:$0]  %s71_s30, 256, %s73_s15, [#allocation11], %s2492_s13, %s2492_s13, %s2493_s14  }
   0xd   :  { %s2495_s20 = smov [#allocation5]   ;;  %s2496_s22 = smov [#allocation9]  }
   0xe   :  { %s31_s21 = sshll.u32 %s2495_s20, 4  ;;  %s59_s1 = sshll.u32 %s2496_s22, 4  ;;  %s32_s21 = int_to_ptr.vmem [resolvable:$true] %s31_s21  ;;  %s60_s1 = int_to_ptr.vmem [resolvable:$true] %s59_s1 }
   0xf   :  { %37 = dma.hbm_to_vmem [thread:$0]  %s30_s2, 256, %s32_s21, [#allocation6], %s2492_s13, %s2492_s13, %s2493_s14  }
  0x10   :  { %s85_s25 = sshll.u32 %s3027_s7, 4  ;;  %s98_s27 = sshll.u32 %s3028_s8, 4  ;;  %s86_s25 = int_to_ptr.hbm [resolvable:$true] %s85_s25  ;;  %s99_s27 = int_to_ptr.hbm [resolvable:$true] %s98_s27 }
  0x11   :  { %65 = dma.hbm_to_vmem [thread:$0]  %s58_s19, 256, %s60_s1, [#allocation8], %s2492_s13, %s2492_s13, %s2493_s14  }
  0x12   :  { %s2497_s28 = smov [#allocation12]   ;;  %s2498_s30 = smov [#allocation13]  }
  0x13   :  { %s87_s29 = sshll.u32 %s2497_s28, 4  ;;  %s100_s7 = sshll.u32 %s2498_s30, 4  ;;  %s88_s29 = int_to_ptr.vmem [resolvable:$true] %s87_s29  ;;  %s101_s7 = int_to_ptr.vmem [resolvable:$true] %s100_s7 }
  0x14   :  { %93 = dma.hbm_to_vmem [thread:$0]  %s86_s25, 256, %s88_s29, [#allocation11], %s2492_s13, %s2492_s13, %s2493_s14  }
  0x15   :  { %106 = dma.hbm_to_vmem [thread:$0]  %s99_s27, 256, %s101_s7, [#allocation14], %s2492_s13, %s2492_s13, %s2493_s14  }
  0x16   :  { %2483 = dma.done.wait [#allocation6], 256  }
  0x17   :  { %2484 = vsyncadd [#allocation6], 4294967040 }
  0x18   :  { %2485 = dma.done.wait [#allocation8], 512  }
  0x19   :  { %2486 = vsyncadd [#allocation8], 4294966784 }
  0x1a   :  { %2487 = dma.done.wait [#allocation11], 512  }
  0x1b   :  { %2488 = vsyncadd [#allocation11], 4294966784 }
  0x1c   :  { %2489 = dma.done.wait [#allocation14], 256  }
  0x1d   :  { %2490 = vsyncadd [#allocation14], 4294967040  ;;  %vm154_vm0 = vcmask 1046528   ;;  %vm185_vm1 = vcmask 1041408   ;;  %v142_v1 = vld [vmem:[#allocation5 + $0x8] sm:$0x7f] }
  0x1e   :  { %v141_v2 = vld [vmem:[#allocation5] sm:$0xff]  ;;  %v2607_v3 = vld [vmem:[#allocation7 + $0x8] sm:$0x3]  ;;  %2050 = vmatpush.msk.msra.mxu0 %vm154_vm0, %v142_v1  ;;  %vm147_vm2 = vcmask 121856   ;;  %v2614_v5 = vld [vmem:[#allocation7] sm:$0xff]  ;;  %v2499_v6 = vmov 0.0  }
  0x1f   :  { %2053 = vmatpush.msk.msra.mxu1 %vm185_vm1, %v2607_v3  ;;  %v137_v4 = vld [vmem:[%s3020_s0] sm:$0xff]  ;;  %2055 = vmatpush.msk.msra.mxu3 %vm185_vm1, %v2607_v3  ;;  %s2500_s15 = smov 98   ;;  %s2502_s16 = smov 108   ;;  %vm251_vm7 = vcmask 74752   ;;  %vm181_vm8 = vcmask 80896  }
  0x20   :  { %2064 = vmatpush.msk.msra.mxu2 %vm185_vm1, %v2607_v3  ;;  %173 = vmatpush.msra.mxu0 %v141_v2  ;;  %v2640_v7 = vld [vmem:[%s3023_s3] ss:$0 sm:$0xff]  ;;  %s2501_s3 = smov 10  }
  0x21   :  { %204 = vmatpush.msra.mxu1 %v2614_v5  ;;  %2051 = vmatmul.msk.f32.vlgmr.msra.gmra.mxu0 %vm147_vm2, %v137_v4 }
  0x22   :  { %205 = vmatmul.f32.vlgmr.msra.gmra.mxu1 %v2499_v6  ;;  %270 = vmatpush.msra.mxu3 %v2614_v5 }
  0x23   :  { %2061 = vmatpush.msk.msrb.mxu1 %vm185_vm1, %v2607_v3  ;;  %495 = vmatpush.msra.mxu2 %v2614_v5 }
  0x24   :  { %2058 = vmatpush.msk.msrb.mxu3 %vm185_vm1, %v2607_v3  ;;  %2070 = vmatpush.msk.msrb.mxu0 %vm185_vm1, %v2607_v3 }
  0x25   :  { %420 = vmatpush.msrb.mxu1 %v2614_v5 }
  0x26   :  { %345 = vmatpush.msrb.mxu3 %v2614_v5  ;;  %637 = vmatpush.msrb.mxu0 %v2614_v5 }
  0x27   :  { %2073 = vmatpush.msk.msra.mxu1 %vm185_vm1, %v2607_v3 }
  0x29   :  { %711 = vmatpush.msra.mxu1 %v2614_v5 }
  0x9e   :  { %v175_v8 = vpop.f32.mrf.mxu0 }
  0x9f   :  { %v206_v9 = vpop.f32.mrf.mxu1  ;;  %v2643_v10 = vadd.f32 %v2640_v7, %v175_v8 }
  0xa1   :  { %v209_v11 = vadd.f32 %v206_v9, %v2643_v10 }
  0xa3   :  { %2147 = vtanh.f32 %v209_v11  ;;  %v2054_v13 = vmul.f32 -1.442695, %v209_v11 }
  0xa5   :  { %2149 = vpow2.f32 %v2054_v13 }
  0xa9   :  { %v2148_v12 = vpop.eup %2147 }
  0xaa   :  { %232 = vrot.lane.b32.xlu0 %v2148_v12, %s2500_s15 }
  0xab   :  { %v2150_v14 = vpop.eup %2149 }
  0xac   :  { %v213_v15 = vadd.f32 1.0, %v2150_v14 }
  0xae   :  { %2151 = vrcp.f32 %v213_v15  ;;  %v225_v21 = vand.u32 2147483648, %v213_v15  ;;  %vm219_vm4 = vweird.f32 %v213_v15  ;;  %v223_v22 = vand.u32 2147483647, %v213_v15 }
  0xb0   :  { %v226_v24 = vor.u32 1.1754944e-38, %v225_v21  ;;  %vm224_vm6 = vcmp.eq.f32.partialorder %v223_v22, 8.507059e+37 }
  0xb4   :  { %v2152_v16 = vpop.eup %2151 }
  0xb5   :  { %v215_v17 = vmul.f32 %v2152_v16, %v213_v15  ;;  %vm220_vm3 = vweird.f32 %v2152_v16 }
  0xb6   :  { %vm221_vm5 = vmor %vm219_vm4, %vm220_vm3 }
  0xb7   :  { %v216_v18 = vsub.f32 1.0, %v215_v17 }
  0xb9   :  { %v217_v19 = vmul.f32 %v2152_v16, %v216_v18 }
  0xbb   :  { %v218_v20 = vadd.f32 %v2152_v16, %v217_v19 }
  0xbd   :  { %v222_v23 = vsel %vm221_vm5, %v2152_v16, %v218_v20 }
  0xbe   :  { %v227_v26 = vsel %vm224_vm6, %v226_v24, %v222_v23 }
  0xbf   :  { %v230_v28 = vmul.f32 0.0, %v227_v26 }
 0x11c   :  { %v233_v25 = vpop.permute.xlu0 %232 }
 0x11d   :  { %v235_v27 = vmul.f32 %v233_v25, %v227_v26 }
 0x11f   :  { %237 = vrot.lane.b32.xlu0 %v235_v27, %s2501_s3 }
 0x191   :  { %v238_v29 = vpop.permute.xlu0 %237 }
 0x192   :  { %v240_v30 = vadd.f32 %v238_v29, %v230_v28 }
 0x194   :  { %2153 = vtanh.f32 %v240_v30  ;;  %v300_v54 = vrot.slane %v240_v30, 6 }
 0x19a   :  { %v2154_v31 = vpop.eup %2153 }
 0x19b   :  { %243 = vrot.lane.b32.xlu1 %v2154_v31, %s2501_s3 }
 0x20d   :  { %v244_v32 = vpop.permute.xlu1 %243 }
 0x20e   :  { %v246_v33 = vmul.f32 %v244_v32, %v227_v26 }
 0x210   :  { %248 = vrot.lane.b32.xlu1 %v246_v33, %s2502_s16 }
 0x282   :  { %v249_v34 = vpop.permute.xlu1 %248 }
 0x283   :  { %252 = vst.msk [vmem:[#allocation2] sm:$0x3] %vm251_vm7, %v249_v34  ;;  %2056 = vmatmul.msk.f32.vlgmr.msra.gmra.mxu3 %vm181_vm8, %v249_v34 }
 0x284   :  { %2067 = vmatpush.msk.msra.mxu3 %vm185_vm1, %v2607_v3 }
 0x286   :  { %563 = vmatpush.msra.mxu3 %v2614_v5 }
 0x306   :  { %v272_v35 = vpop.f32.mrf.mxu3 }
 0x307   :  { %v276_v36 = vrot.slane %v272_v35, 6 }
 0x309   :  { %v278_v37 = vadd.f32 %v276_v36, %v2643_v10 }
 0x30b   :  { %2155 = vtanh.f32 %v278_v37  ;;  %v2057_v39 = vmul.f32 -1.442695, %v278_v37 }
 0x30d   :  { %2157 = vpow2.f32 %v2057_v39 }
 0x311   :  { %v2156_v38 = vpop.eup %2155 }
 0x312   :  { %304 = vrot.lane.b32.xlu2 %v2156_v38, %s2500_s15 }
 0x313   :  { %v2158_v40 = vpop.eup %2157 }
 0x314   :  { %v282_v41 = vadd.f32 1.0, %v2158_v40 }
 0x316   :  { %2159 = vrcp.f32 %v282_v41  ;;  %v294_v47 = vand.u32 2147483648, %v282_v41  ;;  %vm288_vm10 = vweird.f32 %v282_v41  ;;  %v292_v48 = vand.u32 2147483647, %v282_v41 }
 0x318   :  { %v295_v50 = vor.u32 1.1754944e-38, %v294_v47  ;;  %vm293_vm12 = vcmp.eq.f32.partialorder %v292_v48, 8.507059e+37 }
 0x31c   :  { %v2160_v42 = vpop.eup %2159 }
 0x31d   :  { %v284_v43 = vmul.f32 %v2160_v42, %v282_v41  ;;  %vm289_vm9 = vweird.f32 %v2160_v42 }
 0x31e   :  { %vm290_vm11 = vmor %vm288_vm10, %vm289_vm9 }
 0x31f   :  { %v285_v44 = vsub.f32 1.0, %v284_v43 }
 0x321   :  { %v286_v45 = vmul.f32 %v2160_v42, %v285_v44 }
 0x323   :  { %v287_v46 = vadd.f32 %v2160_v42, %v286_v45 }
 0x325   :  { %v291_v49 = vsel %vm290_vm11, %v2160_v42, %v287_v46 }
 0x326   :  { %v296_v52 = vsel %vm293_vm12, %v295_v50, %v291_v49  ;;  %vm323_vm12 = vcmask 76802  }
 0x327   :  { %v302_v55 = vmul.f32 %v300_v54, %v296_v52 }
 0x36c   :  { %v305_v51 = vpop.permute.xlu2 %304 }
 0x36d   :  { %v307_v53 = vmul.f32 %v305_v51, %v296_v52 }
 0x36f   :  { %309 = vrot.lane.b32.xlu2 %v307_v53, %s2501_s3 }
 0x3c9   :  { %v310_v56 = vpop.permute.xlu2 %309 }
 0x3ca   :  { %v312_v57 = vadd.f32 %v310_v56, %v302_v55  ;;  %v138_v56 = vld [vmem:[%s3020_s0 + $0x8] sm:$0xff] }
 0x3cb   :  { %2052 = vmatmul.msk.f32.gmra.mxu0 %vm147_vm2, %v138_v56 }
 0x3cc   :  { %2161 = vtanh.f32 %v312_v57  ;;  %v375_v21 = vrot.slane %v312_v57, 6 }
 0x3d2   :  { %v2162_v58 = vpop.eup %2161 }
 0x3d3   :  { %315 = vrot.lane.b32.xlu0 %v2162_v58, %s2501_s3 }
 0x445   :  { %v316_v59 = vpop.permute.xlu0 %315 }
 0x446   :  { %v2659_v60 = vmul.f32 %v316_v59, %v296_v52 }
 0x448   :  { %v325_v61 = vrot.slane %v2659_v60, 2  ;;  %v178_v58 = vpop.f32.mrf.mxu0 }
 0x449   :  { %v2684_v59 = vadd.f32 %v2640_v7, %v178_v58 }
 0x44a   :  { %326 = vrot.lane.b32.xlu1 %v325_v61, %s2502_s16 }
 0x4bc   :  { %v327_v62 = vpop.permute.xlu1 %326 }
 0x4bd   :  { %2059 = vmatmul.msk.f32.vlgmr.msrb.gmra.mxu3 %vm181_vm8, %v327_v62 }
 0x540   :  { %v347_v63 = vpop.f32.mrf.mxu3 }
 0x541   :  { %v351_v0 = vrot.slane %v347_v63, 4 }
 0x543   :  { %v353_v1 = vadd.f32 %v351_v0, %v2643_v10 }
 0x545   :  { %2163 = vtanh.f32 %v353_v1  ;;  %v2060_v3 = vmul.f32 -1.442695, %v353_v1 }
 0x547   :  { %2165 = vpow2.f32 %v2060_v3 }
 0x54b   :  { %v2164_v2 = vpop.eup %2163 }
 0x54c   :  { %379 = vrot.lane.b32.xlu2 %v2164_v2, %s2500_s15 }
 0x54d   :  { %v2166_v4 = vpop.eup %2165 }
 0x54e   :  { %v357_v5 = vadd.f32 1.0, %v2166_v4 }
 0x550   :  { %2167 = vrcp.f32 %v357_v5  ;;  %v369_v14 = vand.u32 2147483648, %v357_v5  ;;  %vm363_vm14 = vweird.f32 %v357_v5  ;;  %v367_v15 = vand.u32 2147483647, %v357_v5 }
 0x552   :  { %v370_v17 = vor.u32 1.1754944e-38, %v369_v14  ;;  %vm368_vm0 = vcmp.eq.f32.partialorder %v367_v15, 8.507059e+37 }
 0x556   :  { %v2168_v8 = vpop.eup %2167 }
 0x557   :  { %v359_v9 = vmul.f32 %v2168_v8, %v357_v5  ;;  %vm364_vm13 = vweird.f32 %v2168_v8 }
 0x558   :  { %vm365_vm15 = vmor %vm363_vm14, %vm364_vm13  ;;  %vm398_vm13 = vcmask 78852   ;;  %vm473_vm14 = vcmask 80902  }
 0x559   :  { %v360_v11 = vsub.f32 1.0, %v359_v9 }
 0x55b   :  { %v361_v12 = vmul.f32 %v2168_v8, %v360_v11 }
 0x55d   :  { %v362_v13 = vadd.f32 %v2168_v8, %v361_v12 }
 0x55f   :  { %v366_v16 = vsel %vm365_vm15, %v2168_v8, %v362_v13 }
 0x560   :  { %v371_v19 = vsel %vm368_vm0, %v370_v17, %v366_v16 }
 0x561   :  { %v377_v22 = vmul.f32 %v375_v21, %v371_v19 }
 0x5a6   :  { %v380_v18 = vpop.permute.xlu2 %379 }
 0x5a7   :  { %v382_v20 = vmul.f32 %v380_v18, %v371_v19 }
 0x5a9   :  { %384 = vrot.lane.b32.xlu0 %v382_v20, %s2501_s3 }
 0x61b   :  { %v385_v23 = vpop.permute.xlu0 %384 }
 0x61c   :  { %v387_v24 = vadd.f32 %v385_v23, %v377_v22 }
 0x61e   :  { %2169 = vtanh.f32 %v387_v24  ;;  %v450_v48 = vrot.slane %v387_v24, 6 }
 0x624   :  { %v2170_v25 = vpop.eup %2169 }
 0x625   :  { %390 = vrot.lane.b32.xlu1 %v2170_v25, %s2501_s3  ;;  %v770_v25 = vld [vmem:[#allocation9 + $0x8] sm:$0x3] }
 0x626   :  { %2076 = vmatpush.msk.msrb.mxu2 %vm185_vm1, %v770_v25 }
 0x697   :  { %v391_v26 = vpop.permute.xlu1 %390 }
 0x698   :  { %v2668_v27 = vmul.f32 %v391_v26, %v371_v19  ;;  %v2701_v26 = vld [vmem:[#allocation10 + $0x8] sm:$0x3] }
 0x699   :  { %2079 = vmatpush.msk.msrb.mxu3 %vm185_vm1, %v2701_v26  ;;  %2081 = vmatpush.msk.msra.mxu0 %vm185_vm1, %v2701_v26 }
 0x69a   :  { %v400_v28 = vrot.slane %v2668_v27, 4 }
 0x69c   :  { %401 = vrot.lane.b32.xlu2 %v400_v28, %s2502_s16  ;;  %v769_v28 = vld [vmem:[#allocation9] sm:$0xff] }
 0x69d   :  { %799 = vmatpush.msrb.mxu2 %v769_v28 }
 0x6f6   :  { %v402_v29 = vpop.permute.xlu2 %401 }
 0x6f7   :  { %2062 = vmatmul.msk.f32.vlgmr.msrb.gmra.mxu1 %vm181_vm8, %v402_v29 }
 0x6f8   :  { %2084 = vmatpush.msk.msrb.mxu1 %vm185_vm1, %v2701_v26 }
 0x774   :  { %v422_v30 = vpop.f32.mrf.mxu1 }
 0x775   :  { %v426_v31 = vrot.slane %v422_v30, 2 }
 0x777   :  { %v428_v32 = vadd.f32 %v426_v31, %v2643_v10 }
 0x779   :  { %2171 = vtanh.f32 %v428_v32  ;;  %v2063_v34 = vmul.f32 -1.442695, %v428_v32 }
 0x77b   :  { %2173 = vpow2.f32 %v2063_v34 }
 0x77f   :  { %v2172_v33 = vpop.eup %2171 }
 0x780   :  { %454 = vrot.lane.b32.xlu0 %v2172_v33, %s2500_s15 }
 0x781   :  { %v2174_v35 = vpop.eup %2173 }
 0x782   :  { %v432_v36 = vadd.f32 1.0, %v2174_v35 }
 0x784   :  { %2175 = vrcp.f32 %v432_v36  ;;  %v444_v42 = vand.u32 2147483648, %v432_v36  ;;  %vm438_vm4 = vweird.f32 %v432_v36  ;;  %v442_v43 = vand.u32 2147483647, %v432_v36 }
 0x786   :  { %v445_v44 = vor.u32 1.1754944e-38, %v444_v42  ;;  %vm443_vm6 = vcmp.eq.f32.partialorder %v442_v43, 8.507059e+37 }
 0x78a   :  { %v2176_v37 = vpop.eup %2175 }
 0x78b   :  { %v434_v38 = vmul.f32 %v2176_v37, %v432_v36  ;;  %vm439_vm3 = vweird.f32 %v2176_v37  ;;  %v2734_v36 = vld [vmem:[%s3026_s6] ss:$0 sm:$0xff] }
 0x78c   :  { %vm440_vm5 = vmor %vm438_vm4, %vm439_vm3 }
 0x78d   :  { %v435_v39 = vsub.f32 1.0, %v434_v38 }
 0x78f   :  { %v436_v40 = vmul.f32 %v2176_v37, %v435_v39 }
 0x791   :  { %v437_v41 = vadd.f32 %v2176_v37, %v436_v40 }
 0x793   :  { %v441_v10 = vsel %vm440_vm5, %v2176_v37, %v437_v41 }
 0x794   :  { %v446_v46 = vsel %vm443_vm6, %v445_v44, %v441_v10 }
 0x795   :  { %v452_v49 = vmul.f32 %v450_v48, %v446_v46 }
 0x7f2   :  { %v455_v45 = vpop.permute.xlu0 %454 }
 0x7f3   :  { %v457_v47 = vmul.f32 %v455_v45, %v446_v46 }
 0x7f5   :  { %459 = vrot.lane.b32.xlu1 %v457_v47, %s2501_s3 }
 0x867   :  { %v460_v50 = vpop.permute.xlu1 %459 }
 0x868   :  { %v462_v51 = vadd.f32 %v460_v50, %v452_v49 }
 0x86a   :  { %2177 = vtanh.f32 %v462_v51  ;;  %v522_v17 = vrot.slane %v462_v51, 6 }
 0x870   :  { %v2178_v52 = vpop.eup %2177 }
 0x871   :  { %465 = vrot.lane.b32.xlu2 %v2178_v52, %s2501_s3 }
 0x8cb   :  { %v466_v53 = vpop.permute.xlu2 %465 }
 0x8cc   :  { %v468_v54 = vmul.f32 %v466_v53, %v446_v46 }
 0x8ce   :  { %v475_v55 = vrot.slane %v468_v54, 6 }
 0x8d0   :  { %476 = vrot.lane.b32.xlu0 %v475_v55, %s2502_s16 }
 0x942   :  { %v477_v57 = vpop.permute.xlu0 %476 }
 0x943   :  { %2065 = vmatmul.msk.f32.vlgmr.msra.gmra.mxu2 %vm181_vm8, %v477_v57 }
 0x944   :  { %2096 = vmatpush.msk.msra.mxu2 %vm185_vm1, %v2701_v26 }
 0x9c6   :  { %v497_v61 = vpop.f32.mrf.mxu2 }
 0x9c7   :  { %v500_v62 = vadd.f32 %v497_v61, %v2684_v59 }
 0x9c9   :  { %2179 = vtanh.f32 %v500_v62  ;;  %v2066_v0 = vmul.f32 -1.442695, %v500_v62 }
 0x9cb   :  { %2181 = vpow2.f32 %v2066_v0 }
 0x9cf   :  { %v2180_v63 = vpop.eup %2179 }
 0x9d0   :  { %526 = vrot.lane.b32.xlu1 %v2180_v63, %s2500_s15 }
 0x9d1   :  { %v2182_v1 = vpop.eup %2181 }
 0x9d2   :  { %v504_v2 = vadd.f32 1.0, %v2182_v1 }
 0x9d4   :  { %2183 = vrcp.f32 %v504_v2  ;;  %v516_v7 = vand.u32 2147483648, %v504_v2  ;;  %vm510_vm9 = vweird.f32 %v504_v2  ;;  %v514_v11 = vand.u32 2147483647, %v504_v2 }
 0x9d6   :  { %v517_v13 = vor.u32 1.1754944e-38, %v516_v7  ;;  %vm515_vm11 = vcmp.eq.f32.partialorder %v514_v11, 8.507059e+37 }
 0x9da   :  { %v2184_v3 = vpop.eup %2183 }
 0x9db   :  { %v506_v4 = vmul.f32 %v2184_v3, %v504_v2  ;;  %vm511_vm2 = vweird.f32 %v2184_v3 }
 0x9dc   :  { %vm512_vm10 = vmor %vm510_vm9, %vm511_vm2 }
 0x9dd   :  { %v507_v5 = vsub.f32 1.0, %v506_v4 }
 0x9df   :  { %v508_v8 = vmul.f32 %v2184_v3, %v507_v5 }
 0x9e1   :  { %v509_v9 = vadd.f32 %v2184_v3, %v508_v8 }
 0x9e3   :  { %v513_v12 = vsel %vm512_vm10, %v2184_v3, %v509_v9 }
 0x9e4   :  { %v518_v15 = vsel %vm515_vm11, %v517_v13, %v513_v12 }
 0x9e5   :  { %v524_v18 = vmul.f32 %v522_v17, %v518_v15 }
 0xa42   :  { %v527_v14 = vpop.permute.xlu1 %526 }
 0xa43   :  { %v529_v16 = vmul.f32 %v527_v14, %v518_v15 }
 0xa45   :  { %531 = vrot.lane.b32.xlu2 %v529_v16, %s2501_s3 }
 0xa4d   :  { %320 = vrot.lane.b32.xlu2 %v2659_v60, %s2502_s16 }
 0xa9f   :  { %v532_v19 = vpop.permute.xlu2 %531 }
 0xaa0   :  { %v2691_v20 = vadd.f32 %v532_v19, %v524_v18 }
 0xaa2   :  { %2185 = vtanh.f32 %v2691_v20  ;;  %v593_v11 = vrot.slane %v2691_v20, 6 }
 0xaa7   :  { %v321_v21 = vpop.permute.xlu2 %320 }
 0xaa8   :  { %v2186_v22 = vpop.eup %2185  ;;  %324 = vst.msk [vmem:[#allocation2] sm:$0xc] %vm323_vm12, %v321_v21 }
 0xaa9   :  { %537 = vrot.lane.b32.xlu0 %v2186_v22, %s2501_s3 }
 0xab1   :  { %395 = vrot.lane.b32.xlu0 %v2668_v27, %s2502_s16  ;;  %v2706_v27 = vld [vmem:[#allocation10] sm:$0xff] }
 0xab2   :  { %825 = vmatpush.msrb.mxu3 %v2706_v27  ;;  %890 = vmatpush.msra.mxu0 %v2706_v27 }
 0xab3   :  { %964 = vmatpush.msrb.mxu1 %v2706_v27  ;;  %1254 = vmatpush.msra.mxu2 %v2706_v27 }
 0xb1b   :  { %v538_v23 = vpop.permute.xlu0 %537 }
 0xb1c   :  { %v540_v24 = vmul.f32 %v538_v23, %v518_v15 }
 0xb1e   :  { %542 = vrot.lane.b32.xlu1 %v540_v24, %s2502_s16 }
 0xb23   :  { %v396_v60 = vpop.permute.xlu0 %395 }
 0xb24   :  { %399 = vst.msk [vmem:[#allocation2] sm:$0x30] %vm398_vm13, %v396_v60 }
 0xb26   :  { %470 = vrot.lane.b32.xlu1 %v468_v54, %s2502_s16 }
 0xb90   :  { %v543_v29 = vpop.permute.xlu1 %542 }
 0xb91   :  { %545 = vst.msk [vmem:[#allocation2 + $0x8] sm:$0x3] %vm251_vm7, %v543_v29  ;;  %2068 = vmatmul.msk.f32.vlgmr.msra.gmra.mxu3 %vm181_vm8, %v543_v29 }
 0xb92   :  { %2087 = vmatpush.msk.msra.mxu3 %vm185_vm1, %v2701_v26 }
 0xb94   :  { %1038 = vmatpush.msra.mxu3 %v2706_v27 }
 0xb98   :  { %v471_v30 = vpop.permute.xlu1 %470 }
 0xb99   :  { %474 = vst.msk [vmem:[#allocation2] sm:$0xc0] %vm473_vm14, %v471_v30  ;;  %826 = vmatmul.f32.vlgmr.msrb.gmra.mxu3 %v2499_v6 }
 0xb9a   :  { %2099 = vmatpush.msk.msrb.mxu3 %vm185_vm1, %v2701_v26 }
 0xb9c   :  { %1328 = vmatpush.msrb.mxu3 %v2706_v27 }
 0xba0   :  { %v765_v31 = vld [vmem:[#allocation2] sm:$0xff] }
 0xba1   :  { %2077 = vmatmul.msk.f32.vlgmr.msrb.gmra.mxu2 %vm181_vm8, %v765_v31 }
 0xc14   :  { %v565_v32 = vpop.f32.mrf.mxu3 }
 0xc15   :  { %v569_v33 = vrot.slane %v565_v32, 6 }
 0xc17   :  { %v571_v34 = vadd.f32 %v569_v33, %v2684_v59 }
 0xc19   :  { %2187 = vtanh.f32 %v571_v34  ;;  %v2069_v42 = vmul.f32 -1.442695, %v571_v34 }
 0xc1c   :  { %v827_v38 = vpop.f32.mrf.mxu3 }
 0xc1f   :  { %v2188_v35 = vpop.eup %2187 }
 0xc20   :  { %597 = vrot.lane.b32.xlu2 %v2188_v35, %s2500_s15 }
 0xc24   :  { %v801_v37 = vpop.f32.mrf.mxu2 }
 0xc25   :  { %v2737_v39 = vadd.f32 %v2734_v36, %v801_v37 }
 0xc27   :  { %v830_v40 = vadd.f32 %v827_v38, %v2737_v39 }
 0xc29   :  { %2189 = vtanh.f32 %v830_v40  ;;  %v2080_v50 = vmul.f32 -1.442695, %v830_v40 }
 0xc2a   :  { %2191 = vpow2.f32 %v2069_v42 }
 0xc2f   :  { %v2190_v41 = vpop.eup %2189 }
 0xc30   :  { %853 = vrot.lane.b32.xlu0 %v2190_v41, %s2500_s15  ;;  %v2192_v43 = vpop.eup %2191 }
 0xc31   :  { %v575_v10 = vadd.f32 1.0, %v2192_v43 }
 0xc33   :  { %2193 = vrcp.f32 %v575_v10  ;;  %v587_v49 = vand.u32 2147483648, %v575_v10  ;;  %vm581_vm0 = vweird.f32 %v575_v10  ;;  %v585_v51 = vand.u32 2147483647, %v575_v10 }
 0xc34   :  { %2195 = vpow2.f32 %v2080_v50 }
 0xc35   :  { %v588_v53 = vor.u32 1.1754944e-38, %v587_v49  ;;  %vm586_vm4 = vcmp.eq.f32.partialorder %v585_v51, 8.507059e+37 }
 0xc39   :  { %v2194_v44 = vpop.eup %2193 }
 0xc3a   :  { %v577_v45 = vmul.f32 %v2194_v44, %v575_v10  ;;  %vm582_vm15 = vweird.f32 %v2194_v44  ;;  %v2196_v57 = vpop.eup %2195 }
 0xc3b   :  { %vm583_vm3 = vmor %vm581_vm0, %vm582_vm15  ;;  %v834_v58 = vadd.f32 1.0, %v2196_v57 }
 0xc3c   :  { %v578_v46 = vsub.f32 1.0, %v577_v45 }
 0xc3d   :  { %2197 = vrcp.f32 %v834_v58  ;;  %v846_v2 = vand.u32 2147483648, %v834_v58  ;;  %vm840_vm6 = vweird.f32 %v834_v58  ;;  %v844_v3 = vand.u32 2147483647, %v834_v58 }
 0xc3e   :  { %v579_v47 = vmul.f32 %v2194_v44, %v578_v46 }
 0xc3f   :  { %v847_v5 = vor.u32 1.1754944e-38, %v846_v2  ;;  %vm845_vm9 = vcmp.eq.f32.partialorder %v844_v3, 8.507059e+37 }
 0xc40   :  { %v580_v48 = vadd.f32 %v2194_v44, %v579_v47 }
 0xc42   :  { %v584_v52 = vsel %vm583_vm3, %v2194_v44, %v580_v48 }
 0xc43   :  { %v589_v55 = vsel %vm586_vm4, %v588_v53, %v584_v52  ;;  %v2198_v61 = vpop.eup %2197 }
 0xc44   :  { %v836_v62 = vmul.f32 %v2198_v61, %v834_v58  ;;  %vm841_vm5 = vweird.f32 %v2198_v61  ;;  %v595_v12 = vmul.f32 %v593_v11, %v589_v55 }
 0xc45   :  { %vm842_vm2 = vmor %vm840_vm6, %vm841_vm5 }
 0xc46   :  { %v837_v63 = vsub.f32 1.0, %v836_v62 }
 0xc48   :  { %v838_v0 = vmul.f32 %v2198_v61, %v837_v63 }
 0xc4a   :  { %v839_v1 = vadd.f32 %v2198_v61, %v838_v0 }
 0xc4c   :  { %v843_v4 = vsel %vm842_vm2, %v2198_v61, %v839_v1 }
 0xc4d   :  { %v848_v9 = vsel %vm845_vm9, %v847_v5, %v843_v4 }
 0xc4e   :  { %v851_v16 = vmul.f32 0.0, %v848_v9 }
 0xc7a   :  { %v598_v54 = vpop.permute.xlu2 %597 }
 0xc7b   :  { %v600_v56 = vmul.f32 %v598_v54, %v589_v55 }
 0xc7d   :  { %602 = vrot.lane.b32.xlu1 %v600_v56, %s2501_s3 }
 0xca2   :  { %v854_v8 = vpop.permute.xlu0 %853 }
 0xca3   :  { %v856_v7 = vmul.f32 %v854_v8, %v848_v9 }
 0xca5   :  { %858 = vrot.lane.b32.xlu2 %v856_v7, %s2501_s3 }
 0xcef   :  { %v603_v13 = vpop.permute.xlu1 %602 }
 0xcf0   :  { %v2744_v14 = vadd.f32 %v603_v13, %v595_v12 }
 0xcf2   :  { %2199 = vtanh.f32 %v2744_v14  ;;  %v667_v5 = vrot.slane %v2744_v14, 6 }
 0xcf8   :  { %v2200_v15 = vpop.eup %2199 }
 0xcf9   :  { %608 = vrot.lane.b32.xlu0 %v2200_v15, %s2501_s3 }
 0xcff   :  { %v859_v17 = vpop.permute.xlu2 %858 }
 0xd00   :  { %v2748_v18 = vadd.f32 %v859_v17, %v851_v16 }
 0xd02   :  { %2201 = vtanh.f32 %v2748_v18  ;;  %v920_v12 = vrot.slane %v2748_v18, 6 }
 0xd08   :  { %v2202_v19 = vpop.eup %2201 }
 0xd09   :  { %864 = vrot.lane.b32.xlu1 %v2202_v19, %s2501_s3 }
 0xd6b   :  { %v609_v21 = vpop.permute.xlu0 %608 }
 0xd6c   :  { %v2752_v20 = vmul.f32 %v609_v21, %v589_v55 }
 0xd6e   :  { %v617_v22 = vrot.slane %v2752_v20, 2 }
 0xd70   :  { %618 = vrot.lane.b32.xlu2 %v617_v22, %s2502_s16 }
 0xd7b   :  { %v865_v23 = vpop.permute.xlu1 %864 }
 0xd7c   :  { %v867_v24 = vmul.f32 %v865_v23, %v848_v9 }
 0xd7e   :  { %869 = vrot.lane.b32.xlu0 %v867_v24, %s2502_s16 }
 0xdca   :  { %v619_v60 = vpop.permute.xlu2 %618 }
 0xdcb   :  { %2071 = vmatmul.msk.f32.vlgmr.msrb.gmra.mxu0 %vm181_vm8, %v619_v60 }
 0xdcc   :  { %2090 = vmatpush.msk.msrb.mxu0 %vm185_vm1, %v2701_v26 }
 0xdce   :  { %1112 = vmatpush.msrb.mxu0 %v2706_v27 }
 0xdf0   :  { %v870_v25 = vpop.permute.xlu0 %869 }
 0xdf1   :  { %872 = vst.msk [vmem:[#allocation3] sm:$0x3] %vm251_vm7, %v870_v25  ;;  %2082 = vmatmul.msk.f32.vlgmr.msra.gmra.mxu0 %vm181_vm8, %v870_v25 }
 0xe48   :  { %v639_v28 = vpop.f32.mrf.mxu0 }
 0xe49   :  { %v643_v29 = vrot.slane %v639_v28, 4 }
 0xe4b   :  { %v645_v30 = vadd.f32 %v643_v29, %v2684_v59 }
 0xe4d   :  { %2203 = vtanh.f32 %v645_v30  ;;  %v2072_v37 = vmul.f32 -1.442695, %v645_v30 }
 0xe53   :  { %v2204_v31 = vpop.eup %2203 }
 0xe54   :  { %671 = vrot.lane.b32.xlu1 %v2204_v31, %s2500_s15 }
 0xe6e   :  { %v892_v32 = vpop.f32.mrf.mxu0 }
 0xe6f   :  { %v896_v33 = vrot.slane %v892_v32, 6 }
 0xe71   :  { %v898_v34 = vadd.f32 %v896_v33, %v2737_v39 }
 0xe73   :  { %2205 = vtanh.f32 %v898_v34  ;;  %v2083_v41 = vmul.f32 -1.442695, %v898_v34 }
 0xe74   :  { %2207 = vpow2.f32 %v2072_v37 }
 0xe79   :  { %v2206_v35 = vpop.eup %2205 }
 0xe7a   :  { %924 = vrot.lane.b32.xlu2 %v2206_v35, %s2500_s15  ;;  %v2208_v38 = vpop.eup %2207 }
 0xe7b   :  { %v649_v40 = vadd.f32 1.0, %v2208_v38 }
 0xe7d   :  { %2209 = vrcp.f32 %v649_v40  ;;  %v661_v49 = vand.u32 2147483648, %v649_v40  ;;  %vm655_vm11 = vweird.f32 %v649_v40  ;;  %v659_v50 = vand.u32 2147483647, %v649_v40 }
 0xe7e   :  { %2211 = vpow2.f32 %v2083_v41 }
 0xe7f   :  { %v662_v53 = vor.u32 1.1754944e-38, %v661_v49  ;;  %vm660_vm0 = vcmp.eq.f32.partialorder %v659_v50, 8.507059e+37 }
 0xe83   :  { %v2210_v42 = vpop.eup %2209 }
 0xe84   :  { %v2212_v43 = vpop.eup %2211  ;;  %v651_v10 = vmul.f32 %v2210_v42, %v649_v40  ;;  %vm656_vm10 = vweird.f32 %v2210_v42 }
 0xe85   :  { %v902_v44 = vadd.f32 1.0, %v2212_v43  ;;  %vm657_vm15 = vmor %vm655_vm11, %vm656_vm10 }
 0xe86   :  { %v652_v45 = vsub.f32 1.0, %v651_v10 }
 0xe87   :  { %2213 = vrcp.f32 %v902_v44  ;;  %v914_v62 = vand.u32 2147483648, %v902_v44  ;;  %vm908_vm4 = vweird.f32 %v902_v44  ;;  %v912_v63 = vand.u32 2147483647, %v902_v44 }
 0xe88   :  { %v653_v46 = vmul.f32 %v2210_v42, %v652_v45 }
 0xe89   :  { %v915_v1 = vor.u32 1.1754944e-38, %v914_v62  ;;  %vm913_vm6 = vcmp.eq.f32.partialorder %v912_v63, 8.507059e+37 }
 0xe8a   :  { %v654_v48 = vadd.f32 %v2210_v42, %v653_v46 }
 0xe8c   :  { %v658_v52 = vsel %vm657_vm15, %v2210_v42, %v654_v48 }
 0xe8d   :  { %v2214_v47 = vpop.eup %2213  ;;  %v663_v55 = vsel %vm660_vm0, %v662_v53, %v658_v52 }
 0xe8e   :  { %v904_v51 = vmul.f32 %v2214_v47, %v902_v44  ;;  %vm909_vm3 = vweird.f32 %v2214_v47  ;;  %v669_v8 = vmul.f32 %v667_v5, %v663_v55 }
 0xe8f   :  { %vm910_vm5 = vmor %vm908_vm4, %vm909_vm3 }
 0xe90   :  { %v905_v54 = vsub.f32 1.0, %v904_v51 }
 0xe92   :  { %v906_v58 = vmul.f32 %v2214_v47, %v905_v54 }
 0xe94   :  { %v907_v61 = vadd.f32 %v2214_v47, %v906_v58 }
 0xe96   :  { %v911_v0 = vsel %vm910_vm5, %v2214_v47, %v907_v61 }
 0xe97   :  { %v916_v3 = vsel %vm913_vm6, %v915_v1, %v911_v0 }
 0xe98   :  { %v922_v13 = vmul.f32 %v920_v12, %v916_v3 }
 0xec6   :  { %v672_v56 = vpop.permute.xlu1 %671 }
 0xec7   :  { %v674_v57 = vmul.f32 %v672_v56, %v663_v55 }
 0xec9   :  { %676 = vrot.lane.b32.xlu0 %v674_v57, %s2501_s3 }
 0xed4   :  { %v925_v2 = vpop.permute.xlu2 %924 }
 0xed5   :  { %v927_v4 = vmul.f32 %v925_v2, %v916_v3 }
 0xed7   :  { %929 = vrot.lane.b32.xlu1 %v927_v4, %s2501_s3 }
 0xf3b   :  { %v677_v9 = vpop.permute.xlu0 %676 }
 0xf3c   :  { %v2770_v7 = vadd.f32 %v677_v9, %v669_v8 }
 0xf3e   :  { %2215 = vtanh.f32 %v2770_v7 }
 0xf44   :  { %v2216_v11 = vpop.eup %2215 }
 0xf45   :  { %682 = vrot.lane.b32.xlu2 %v2216_v11, %s2501_s3 }
 0xf49   :  { %v930_v15 = vpop.permute.xlu1 %929 }
 0xf4a   :  { %v932_v16 = vadd.f32 %v930_v15, %v922_v13 }
 0xf4c   :  { %2217 = vtanh.f32 %v932_v16  ;;  %v994_v49 = vrot.slane %v932_v16, 6 }
 0xf52   :  { %v2218_v17 = vpop.eup %2217 }
 0xf53   :  { %935 = vrot.lane.b32.xlu0 %v2218_v17, %s2501_s3  ;;  %v741_v17 = vrot.slane %v2770_v7, 6 }
 0xf9f   :  { %v683_v19 = vpop.permute.xlu2 %682 }
 0xfa0   :  { %v2776_v14 = vmul.f32 %v683_v19, %v663_v55 }
 0xfa2   :  { %v691_v21 = vrot.slane %v2776_v14, 4 }
 0xfa4   :  { %692 = vrot.lane.b32.xlu1 %v691_v21, %s2502_s16 }
 0xfc5   :  { %v936_v22 = vpop.permute.xlu0 %935 }
 0xfc6   :  { %v2780_v23 = vmul.f32 %v936_v22, %v916_v3 }
 0xfc8   :  { %v944_v24 = vrot.slane %v2780_v23, 2 }
 0xfca   :  { %945 = vrot.lane.b32.xlu2 %v944_v24, %s2502_s16 }
0x1016   :  { %v693_v18 = vpop.permute.xlu1 %692 }
0x1017   :  { %2074 = vmatmul.msk.f32.vlgmr.msra.gmra.mxu1 %vm181_vm8, %v693_v18 }
0x1018   :  { %2093 = vmatpush.msk.msra.mxu1 %vm185_vm1, %v2701_v26 }
0x101a   :  { %1180 = vmatpush.msra.mxu1 %v2706_v27 }
0x1024   :  { %v946_v60 = vpop.permute.xlu2 %945 }
0x1025   :  { %2085 = vmatmul.msk.f32.vlgmr.msrb.gmra.mxu1 %vm181_vm8, %v946_v60 }
0x1094   :  { %v713_v25 = vpop.f32.mrf.mxu1 }
0x1095   :  { %v717_v42 = vrot.slane %v713_v25, 2 }
0x1097   :  { %v719_v44 = vadd.f32 %v717_v42, %v2684_v59 }
0x1099   :  { %v2075_v59 = vmul.f32 -1.442695, %v719_v44 }
0x10a2   :  { %v966_v28 = vpop.f32.mrf.mxu1 }
0x10a3   :  { %v970_v29 = vrot.slane %v966_v28, 4 }
0x10a5   :  { %v972_v30 = vadd.f32 %v970_v29, %v2737_v39 }
0x10a7   :  { %2219 = vtanh.f32 %v972_v30  ;;  %v2086_v32 = vmul.f32 -1.442695, %v972_v30 }
0x10a9   :  { %2221 = vpow2.f32 %v2086_v32 }
0x10ad   :  { %v2220_v31 = vpop.eup %2219 }
0x10ae   :  { %998 = vrot.lane.b32.xlu0 %v2220_v31, %s2500_s15 }
0x10af   :  { %v2222_v33 = vpop.eup %2221 }
0x10b0   :  { %v976_v34 = vadd.f32 1.0, %v2222_v33 }
0x10b2   :  { %2223 = vrcp.f32 %v976_v34  ;;  %v988_v40 = vand.u32 2147483648, %v976_v34  ;;  %vm982_vm9 = vweird.f32 %v976_v34  ;;  %v986_v41 = vand.u32 2147483647, %v976_v34 }
0x10b3   :  { %2225 = vtanh.f32 %v719_v44 }
0x10b4   :  { %v989_v10 = vor.u32 1.1754944e-38, %v988_v40  ;;  %vm987_vm11 = vcmp.eq.f32.partialorder %v986_v41, 8.507059e+37 }
0x10b8   :  { %v2224_v26 = vpop.eup %2223 }
0x10b9   :  { %v978_v35 = vmul.f32 %v2224_v26, %v976_v34  ;;  %vm983_vm2 = vweird.f32 %v2224_v26  ;;  %v2226_v48 = vpop.eup %2225 }
0x10ba   :  { %vm984_vm10 = vmor %vm982_vm9, %vm983_vm2 }
0x10bb   :  { %v979_v27 = vsub.f32 1.0, %v978_v35 }
0x10bd   :  { %v980_v37 = vmul.f32 %v2224_v26, %v979_v27 }
0x10bf   :  { %v981_v38 = vadd.f32 %v2224_v26, %v980_v37 }
0x10c1   :  { %v985_v43 = vsel %vm984_vm10, %v2224_v26, %v981_v38 }
0x10c2   :  { %v990_v46 = vsel %vm987_vm11, %v989_v10, %v985_v43 }
0x10c3   :  { %v996_v50 = vmul.f32 %v994_v49, %v990_v46 }
0x1120   :  { %v999_v45 = vpop.permute.xlu0 %998 }
0x1121   :  { %v1001_v47 = vmul.f32 %v999_v45, %v990_v46 }
0x1123   :  { %1003 = vrot.lane.b32.xlu1 %v1001_v47, %s2501_s3 }
0x112b   :  { %745 = vrot.lane.b32.xlu1 %v2226_v48, %s2500_s15 }
0x1195   :  { %v1004_v51 = vpop.permute.xlu1 %1003 }
0x1196   :  { %v2794_v52 = vadd.f32 %v1004_v51, %v996_v50 }
0x1198   :  { %2227 = vtanh.f32 %v2794_v52  ;;  %v1068_v40 = vrot.slane %v2794_v52, 6 }
0x1199   :  { %2229 = vpow2.f32 %v2075_v59 }
0x119d   :  { %v746_v5 = vpop.permute.xlu1 %745 }
0x119e   :  { %v2228_v53 = vpop.eup %2227 }
0x119f   :  { %1009 = vrot.lane.b32.xlu2 %v2228_v53, %s2501_s3  ;;  %v2230_v54 = vpop.eup %2229 }
0x11a0   :  { %v723_v55 = vadd.f32 1.0, %v2230_v54 }
0x11a2   :  { %2231 = vrcp.f32 %v723_v55  ;;  %v735_v2 = vand.u32 2147483648, %v723_v55  ;;  %vm729_vm0 = vweird.f32 %v723_v55  ;;  %v733_v3 = vand.u32 2147483647, %v723_v55 }
0x11a4   :  { %v736_v8 = vor.u32 1.1754944e-38, %v735_v2  ;;  %vm734_vm4 = vcmp.eq.f32.partialorder %v733_v3, 8.507059e+37 }
0x11a8   :  { %v2232_v56 = vpop.eup %2231 }
0x11a9   :  { %v725_v57 = vmul.f32 %v2232_v56, %v723_v55  ;;  %vm730_vm15 = vweird.f32 %v2232_v56 }
0x11aa   :  { %vm731_vm3 = vmor %vm729_vm0, %vm730_vm15 }
0x11ab   :  { %v726_v58 = vsub.f32 1.0, %v725_v57 }
0x11ad   :  { %v727_v61 = vmul.f32 %v2232_v56, %v726_v58 }
0x11af   :  { %v728_v0 = vadd.f32 %v2232_v56, %v727_v61 }
0x11b1   :  { %v732_v4 = vsel %vm731_vm3, %v2232_v56, %v728_v0 }
0x11b2   :  { %v737_v9 = vsel %vm734_vm4, %v736_v8, %v732_v4 }
0x11b3   :  { %v748_v11 = vmul.f32 %v746_v5, %v737_v9  ;;  %v743_v21 = vmul.f32 %v741_v17, %v737_v9 }
0x11f9   :  { %v1010_v62 = vpop.permute.xlu2 %1009 }
0x11fa   :  { %v2798_v63 = vmul.f32 %v1010_v62, %v990_v46 }
0x11fc   :  { %v1018_v1 = vrot.slane %v2798_v63, 4 }
0x11fe   :  { %1019 = vrot.lane.b32.xlu0 %v1018_v1, %s2502_s16 }
0x1206   :  { %750 = vrot.lane.b32.xlu0 %v748_v11, %s2501_s3 }
0x1270   :  { %v1020_v12 = vpop.permute.xlu0 %1019 }
0x1271   :  { %2088 = vmatmul.msk.f32.vlgmr.msra.gmra.mxu3 %vm181_vm8, %v1020_v12 }
0x1278   :  { %v751_v19 = vpop.permute.xlu0 %750 }
0x1279   :  { %v753_v22 = vadd.f32 %v751_v19, %v743_v21 }
0x12f4   :  { %v1040_v13 = vpop.f32.mrf.mxu3 }
0x12f5   :  { %v1044_v15 = vrot.slane %v1040_v13, 2 }
0x12f7   :  { %v1046_v16 = vadd.f32 %v1044_v15, %v2737_v39 }
0x12f9   :  { %2233 = vtanh.f32 %v1046_v16  ;;  %v2089_v60 = vmul.f32 -1.442695, %v1046_v16 }
0x12fa   :  { %2235 = vtanh.f32 %v753_v22  ;;  %v1387_v22 = vld [vmem:[#allocation12 + $0x8] sm:$0x3] }
0x12fb   :  { %2237 = vpow2.f32 %v2089_v60  ;;  %2102 = vmatpush.msk.msra.mxu0 %vm185_vm1, %v1387_v22  ;;  %v2845_v60 = vld [vmem:[#allocation13] sm:$0xff] }
0x12ff   :  { %v2234_v24 = vpop.eup %2233 }
0x1300   :  { %1072 = vrot.lane.b32.xlu2 %v2234_v24, %s2500_s15  ;;  %v2236_v18 = vpop.eup %2235  ;;  %v2840_v24 = vld [vmem:[#allocation13 + $0x8] sm:$0x3] }
0x1301   :  { %v2238_v25 = vpop.eup %2237  ;;  %2105 = vmatpush.msk.msrb.mxu1 %vm185_vm1, %v2840_v24  ;;  %2107 = vmatpush.msk.msrb.mxu2 %vm185_vm1, %v2840_v24 }
0x1302   :  { %v1050_v39 = vadd.f32 1.0, %v2238_v25  ;;  %2110 = vmatpush.msk.msra.mxu3 %vm185_vm1, %v2840_v24 }
0x1303   :  { %1442 = vmatpush.msrb.mxu1 %v2845_v60  ;;  %1507 = vmatpush.msrb.mxu2 %v2845_v60 }
0x1304   :  { %2239 = vrcp.f32 %v1050_v39  ;;  %v1062_v32 = vand.u32 2147483648, %v1050_v39  ;;  %vm1056_vm6 = vweird.f32 %v1050_v39  ;;  %v1060_v33 = vand.u32 2147483647, %v1050_v39  ;;  %1581 = vmatpush.msra.mxu3 %v2845_v60 }
0x1306   :  { %v1063_v26 = vor.u32 1.1754944e-38, %v1062_v32  ;;  %vm1061_vm9 = vcmp.eq.f32.partialorder %v1060_v33, 8.507059e+37 }
0x1308   :  { %756 = vrot.lane.b32.xlu2 %v2236_v18, %s2501_s3  ;;  %v1386_v18 = vld [vmem:[#allocation12] sm:$0xff] }
0x1309   :  { %1416 = vmatpush.msra.mxu0 %v1386_v18 }
0x130a   :  { %v2240_v7 = vpop.eup %2239 }
0x130b   :  { %v1052_v28 = vmul.f32 %v2240_v7, %v1050_v39  ;;  %vm1057_vm5 = vweird.f32 %v2240_v7 }
0x130c   :  { %vm1058_vm2 = vmor %vm1056_vm6, %vm1057_vm5 }
0x130d   :  { %v1053_v29 = vsub.f32 1.0, %v1052_v28 }
0x130f   :  { %v1054_v30 = vmul.f32 %v2240_v7, %v1053_v29 }
0x1310   :  { %687 = vrot.lane.b32.xlu2 %v2776_v14, %s2502_s16 }
0x1311   :  { %v1055_v31 = vadd.f32 %v2240_v7, %v1054_v30 }
0x1313   :  { %v1059_v34 = vsel %vm1058_vm2, %v2240_v7, %v1055_v31 }
0x1314   :  { %v1064_v14 = vsel %vm1061_vm9, %v1063_v26, %v1059_v34 }
0x1315   :  { %v1070_v41 = vmul.f32 %v1068_v40, %v1064_v14 }
0x135a   :  { %v1073_v35 = vpop.permute.xlu2 %1072 }
0x135b   :  { %v1075_v27 = vmul.f32 %v1073_v35, %v1064_v14 }
0x135d   :  { %1077 = vrot.lane.b32.xlu1 %v1075_v27, %s2501_s3 }
0x1362   :  { %v757_v37 = vpop.permute.xlu2 %756 }
0x1363   :  { %v759_v45 = vmul.f32 %v757_v37, %v737_v9 }
0x1365   :  { %613 = vrot.lane.b32.xlu1 %v2752_v20, %s2502_s16 }
0x136a   :  { %v688_v38 = vpop.permute.xlu2 %687 }
0x136b   :  { %690 = vst.msk [vmem:[#allocation2 + $0x8] sm:$0x30] %vm398_vm13, %v688_v38 }
0x13cf   :  { %v1078_v42 = vpop.permute.xlu1 %1077 }
0x13d0   :  { %v1080_v43 = vadd.f32 %v1078_v42, %v1070_v41 }
0x13d2   :  { %2241 = vtanh.f32 %v1080_v43  ;;  %v1139_v11 = vrot.slane %v1080_v43, 6 }
0x13d7   :  { %v614_v10 = vpop.permute.xlu1 %613 }
0x13d8   :  { %v2242_v44 = vpop.eup %2241  ;;  %616 = vst.msk [vmem:[#allocation2 + $0x8] sm:$0xc] %vm323_vm12, %v614_v10 }
0x13d9   :  { %1083 = vrot.lane.b32.xlu0 %v2242_v44, %s2501_s3 }
0x13e1   :  { %761 = vrot.lane.b32.xlu0 %v759_v45, %s2502_s16 }
0x144b   :  { %v1084_v46 = vpop.permute.xlu0 %1083 }
0x144c   :  { %v1086_v20 = vmul.f32 %v1084_v46, %v1064_v14 }
0x144e   :  { %v1092_v47 = vrot.slane %v1086_v20, 6 }
0x1450   :  { %1093 = vrot.lane.b32.xlu1 %v1092_v47, %s2502_s16 }
0x1453   :  { %v762_v48 = vpop.permute.xlu0 %761 }
0x1454   :  { %764 = vst.msk [vmem:[#allocation2 + $0x8] sm:$0xc0] %vm473_vm14, %v762_v48 }
0x145b   :  { %v766_v49 = vld [vmem:[#allocation2 + $0x8] sm:$0xff] }
0x145c   :  { %2078 = vmatmul.msk.f32.gmra.mxu2 %vm181_vm8, %v766_v49 }
0x14c2   :  { %v1094_v50 = vpop.permute.xlu1 %1093 }
0x14c3   :  { %2091 = vmatmul.msk.f32.vlgmr.msrb.gmra.mxu0 %vm181_vm8, %v1094_v50 }
0x14c4   :  { %2122 = vmatpush.msk.msrb.mxu0 %vm185_vm1, %v2840_v24 }
0x14c6   :  { %1871 = vmatpush.msrb.mxu0 %v2845_v60 }
0x14df   :  { %v804_v51 = vpop.f32.mrf.mxu2 }
0x14e0   :  { %v2823_v52 = vadd.f32 %v2734_v36, %v804_v51 }
0x1540   :  { %v1114_v53 = vpop.f32.mrf.mxu0 }
0x1541   :  { %v1117_v59 = vadd.f32 %v1114_v53, %v2823_v52 }
0x1543   :  { %2243 = vtanh.f32 %v1117_v59  ;;  %v2092_v55 = vmul.f32 -1.442695, %v1117_v59 }
0x1545   :  { %2245 = vpow2.f32 %v2092_v55 }
0x1549   :  { %v2244_v54 = vpop.eup %2243 }
0x154a   :  { %1143 = vrot.lane.b32.xlu2 %v2244_v54, %s2500_s15 }
0x154b   :  { %v2246_v56 = vpop.eup %2245 }
0x154c   :  { %v1121_v57 = vadd.f32 1.0, %v2246_v56 }
0x154e   :  { %2247 = vrcp.f32 %v1121_v57  ;;  %v1133_v36 = vand.u32 2147483648, %v1121_v57  ;;  %vm1127_vm11 = vweird.f32 %v1121_v57  ;;  %v1131_v2 = vand.u32 2147483647, %v1121_v57 }
0x1550   :  { %v1134_v4 = vor.u32 1.1754944e-38, %v1133_v36  ;;  %vm1132_vm0 = vcmp.eq.f32.partialorder %v1131_v2, 8.507059e+37 }
0x1554   :  { %v2248_v58 = vpop.eup %2247 }
0x1555   :  { %v1123_v61 = vmul.f32 %v2248_v58, %v1121_v57  ;;  %vm1128_vm10 = vweird.f32 %v2248_v58 }
0x1556   :  { %vm1129_vm15 = vmor %vm1127_vm11, %vm1128_vm10 }
0x1557   :  { %v1124_v62 = vsub.f32 1.0, %v1123_v61 }
0x1559   :  { %v1125_v0 = vmul.f32 %v2248_v58, %v1124_v62 }
0x155b   :  { %v1126_v1 = vadd.f32 %v2248_v58, %v1125_v0 }
0x155d   :  { %v1130_v3 = vsel %vm1129_vm15, %v2248_v58, %v1126_v1 }
0x155e   :  { %v1135_v8 = vsel %vm1132_vm0, %v1134_v4, %v1130_v3 }
0x155f   :  { %v1141_v12 = vmul.f32 %v1139_v11, %v1135_v8 }
0x15a4   :  { %v1144_v5 = vpop.permute.xlu2 %1143 }
0x15a5   :  { %v1146_v9 = vmul.f32 %v1144_v5, %v1135_v8 }
0x15a7   :  { %1148 = vrot.lane.b32.xlu0 %v1146_v9, %s2501_s3 }
0x15af   :  { %940 = vrot.lane.b32.xlu0 %v2780_v23, %s2502_s16 }
0x1619   :  { %v1149_v13 = vpop.permute.xlu0 %1148 }
0x161a   :  { %v2830_v15 = vadd.f32 %v1149_v13, %v1141_v12 }
0x161c   :  { %2249 = vtanh.f32 %v2830_v15  ;;  %v1210_v36 = vrot.slane %v2830_v15, 6 }
0x1621   :  { %v941_v16 = vpop.permute.xlu0 %940 }
0x1622   :  { %v2250_v17 = vpop.eup %2249  ;;  %943 = vst.msk [vmem:[#allocation3] sm:$0xc] %vm323_vm12, %v941_v16 }
0x1623   :  { %1154 = vrot.lane.b32.xlu1 %v2250_v17, %s2501_s3 }
0x162b   :  { %1014 = vrot.lane.b32.xlu1 %v2798_v63, %s2502_s16 }
0x1695   :  { %v1155_v19 = vpop.permute.xlu1 %1154 }
0x1696   :  { %v1157_v21 = vmul.f32 %v1155_v19, %v1135_v8 }
0x1698   :  { %1159 = vrot.lane.b32.xlu2 %v1157_v21, %s2502_s16 }
0x169d   :  { %v1015_v23 = vpop.permute.xlu1 %1014 }
0x169e   :  { %1017 = vst.msk [vmem:[#allocation3] sm:$0x30] %vm398_vm13, %v1015_v23 }
0x16a0   :  { %1088 = vrot.lane.b32.xlu2 %v1086_v20, %s2502_s16 }
0x16f2   :  { %v1160_v63 = vpop.permute.xlu2 %1159 }
0x16f3   :  { %1162 = vst.msk [vmem:[#allocation3 + $0x8] sm:$0x3] %vm251_vm7, %v1160_v63  ;;  %2094 = vmatmul.msk.f32.vlgmr.msra.gmra.mxu1 %vm181_vm8, %v1160_v63 }
0x16f4   :  { %2113 = vmatpush.msk.msra.mxu1 %vm185_vm1, %v2840_v24 }
0x16f6   :  { %1655 = vmatpush.msra.mxu1 %v2845_v60 }
0x16fa   :  { %v1089_v25 = vpop.permute.xlu2 %1088 }
0x16fb   :  { %1091 = vst.msk [vmem:[#allocation3] sm:$0xc0] %vm473_vm14, %v1089_v25  ;;  %1443 = vmatmul.f32.vlgmr.msrb.gmra.mxu1 %v2499_v6  ;;  %v2873_v6 = vld [vmem:[%s3029_s9] ss:$0 sm:$0xff] }
0x16fc   :  { %2125 = vmatpush.msk.msrb.mxu1 %vm185_vm1, %v2840_v24 }
0x16fe   :  { %1945 = vmatpush.msrb.mxu1 %v2845_v60 }
0x1702   :  { %v1382_v39 = vld [vmem:[#allocation3] sm:$0xff] }
0x1703   :  { %2103 = vmatmul.msk.f32.vlgmr.msra.gmra.mxu0 %vm181_vm8, %v1382_v39 }
0x1770   :  { %v1182_v7 = vpop.f32.mrf.mxu1 }
0x1771   :  { %v1186_v28 = vrot.slane %v1182_v7, 6 }
0x1773   :  { %v1188_v29 = vadd.f32 %v1186_v28, %v2823_v52 }
0x1775   :  { %2251 = vtanh.f32 %v1188_v29  ;;  %v2095_v35 = vmul.f32 -1.442695, %v1188_v29 }
0x1778   :  { %v1444_v32 = vpop.f32.mrf.mxu1 }
0x177b   :  { %v2252_v30 = vpop.eup %2251 }
0x177c   :  { %1214 = vrot.lane.b32.xlu0 %v2252_v30, %s2500_s15 }
0x1780   :  { %v1418_v31 = vpop.f32.mrf.mxu0 }
0x1781   :  { %v2876_v33 = vadd.f32 %v2873_v6, %v1418_v31 }
0x1783   :  { %v1447_v34 = vadd.f32 %v1444_v32, %v2876_v33 }
0x1785   :  { %2253 = vtanh.f32 %v1447_v34  ;;  %v2106_v37 = vmul.f32 -1.442695, %v1447_v34 }
0x1786   :  { %2255 = vpow2.f32 %v2095_v35 }
0x178b   :  { %v2254_v26 = vpop.eup %2253 }
0x178c   :  { %1470 = vrot.lane.b32.xlu1 %v2254_v26, %s2500_s15  ;;  %v2256_v14 = vpop.eup %2255 }
0x178d   :  { %v1192_v27 = vadd.f32 1.0, %v2256_v14 }
0x178f   :  { %2257 = vrcp.f32 %v1192_v27  ;;  %v1204_v46 = vand.u32 2147483648, %v1192_v27  ;;  %vm1198_vm4 = vweird.f32 %v1192_v27  ;;  %v1202_v20 = vand.u32 2147483647, %v1192_v27 }
0x1790   :  { %2259 = vpow2.f32 %v2106_v37 }
0x1791   :  { %v1205_v49 = vor.u32 1.1754944e-38, %v1204_v46  ;;  %vm1203_vm6 = vcmp.eq.f32.partialorder %v1202_v20, 8.507059e+37 }
0x1795   :  { %v2258_v38 = vpop.eup %2257 }
0x1796   :  { %v2260_v40 = vpop.eup %2259  ;;  %v1194_v41 = vmul.f32 %v2258_v38, %v1192_v27  ;;  %vm1199_vm3 = vweird.f32 %v2258_v38 }
0x1797   :  { %v1451_v42 = vadd.f32 1.0, %v2260_v40  ;;  %vm1200_vm5 = vmor %vm1198_vm4, %vm1199_vm3 }
0x1798   :  { %v1195_v43 = vsub.f32 1.0, %v1194_v41 }
0x1799   :  { %2261 = vrcp.f32 %v1451_v42  ;;  %v1463_v56 = vand.u32 2147483648, %v1451_v42  ;;  %vm1457_vm9 = vweird.f32 %v1451_v42  ;;  %v1461_v57 = vand.u32 2147483647, %v1451_v42 }
0x179a   :  { %v1196_v10 = vmul.f32 %v2258_v38, %v1195_v43 }
0x179b   :  { %v1464_v61 = vor.u32 1.1754944e-38, %v1463_v56  ;;  %vm1462_vm11 = vcmp.eq.f32.partialorder %v1461_v57, 8.507059e+37 }
0x179c   :  { %v1197_v44 = vadd.f32 %v2258_v38, %v1196_v10 }
0x179e   :  { %v1201_v47 = vsel %vm1200_vm5, %v2258_v38, %v1197_v44 }
0x179f   :  { %v2262_v45 = vpop.eup %2261  ;;  %v1206_v51 = vsel %vm1203_vm6, %v1205_v49, %v1201_v47 }
0x17a0   :  { %v1453_v48 = vmul.f32 %v2262_v45, %v1451_v42  ;;  %vm1458_vm2 = vweird.f32 %v2262_v45  ;;  %v1212_v2 = vmul.f32 %v1210_v36, %v1206_v51 }
0x17a1   :  { %vm1459_vm10 = vmor %vm1457_vm9, %vm1458_vm2 }
0x17a2   :  { %v1454_v59 = vsub.f32 1.0, %v1453_v48 }
0x17a4   :  { %v1455_v54 = vmul.f32 %v2262_v45, %v1454_v59 }
0x17a6   :  { %v1456_v55 = vadd.f32 %v2262_v45, %v1455_v54 }
0x17a8   :  { %v1460_v58 = vsel %vm1459_vm10, %v2262_v45, %v1456_v55 }
0x17a9   :  { %v1465_v0 = vsel %vm1462_vm11, %v1464_v61, %v1460_v58 }
0x17aa   :  { %v1468_v8 = vmul.f32 0.0, %v1465_v0 }
0x17ee   :  { %v1215_v50 = vpop.permute.xlu0 %1214 }
0x17ef   :  { %v1217_v53 = vmul.f32 %v1215_v50, %v1206_v51 }
0x17f1   :  { %1219 = vrot.lane.b32.xlu2 %v1217_v53, %s2501_s3 }
0x17fe   :  { %v1471_v62 = vpop.permute.xlu1 %1470 }
0x17ff   :  { %v1473_v1 = vmul.f32 %v1471_v62, %v1465_v0 }
0x1801   :  { %1475 = vrot.lane.b32.xlu0 %v1473_v1, %s2501_s3 }
0x184b   :  { %v1220_v3 = vpop.permute.xlu2 %1219 }
0x184c   :  { %v2883_v4 = vadd.f32 %v1220_v3, %v1212_v2 }
0x184e   :  { %2263 = vtanh.f32 %v2883_v4  ;;  %v1284_v58 = vrot.slane %v2883_v4, 6 }
0x1854   :  { %v2264_v5 = vpop.eup %2263 }
0x1855   :  { %1225 = vrot.lane.b32.xlu1 %v2264_v5, %s2501_s3 }
0x1873   :  { %v1476_v9 = vpop.permute.xlu0 %1475 }
0x1874   :  { %v2887_v11 = vadd.f32 %v1476_v9, %v1468_v8 }
0x1876   :  { %2265 = vtanh.f32 %v2887_v11  ;;  %v1537_v36 = vrot.slane %v2887_v11, 6 }
0x187c   :  { %v2266_v12 = vpop.eup %2265 }
0x187d   :  { %1481 = vrot.lane.b32.xlu2 %v2266_v12, %s2501_s3 }
0x18c7   :  { %v1226_v13 = vpop.permute.xlu1 %1225 }
0x18c8   :  { %v2891_v15 = vmul.f32 %v1226_v13, %v1206_v51 }
0x18ca   :  { %v1234_v16 = vrot.slane %v2891_v15, 2 }
0x18cc   :  { %1235 = vrot.lane.b32.xlu0 %v1234_v16, %s2502_s16 }
0x18d7   :  { %v1482_v17 = vpop.permute.xlu2 %1481 }
0x18d8   :  { %v1484_v19 = vmul.f32 %v1482_v17, %v1465_v0 }
0x18da   :  { %1486 = vrot.lane.b32.xlu1 %v1484_v19, %s2502_s16 }
0x193e   :  { %v1236_v21 = vpop.permute.xlu0 %1235 }
0x193f   :  { %2097 = vmatmul.msk.f32.vlgmr.msra.gmra.mxu2 %vm181_vm8, %v1236_v21 }
0x1940   :  { %2116 = vmatpush.msk.msra.mxu2 %vm185_vm1, %v2840_v24 }
0x1942   :  { %1729 = vmatpush.msra.mxu2 %v2845_v60 }
0x194c   :  { %v1487_v23 = vpop.permute.xlu1 %1486 }
0x194d   :  { %1489 = vst.msk [vmem:[#allocation2] sm:$0x3] %vm251_vm7, %v1487_v23  ;;  %2108 = vmatmul.msk.f32.vlgmr.msrb.gmra.mxu2 %vm181_vm8, %v1487_v23 }
0x19c2   :  { %v1256_v22 = vpop.f32.mrf.mxu2 }
0x19c3   :  { %v1260_v18 = vrot.slane %v1256_v22, 4 }
0x19c5   :  { %v1262_v63 = vadd.f32 %v1260_v18, %v2823_v52 }
0x19c7   :  { %2267 = vtanh.f32 %v1262_v63  ;;  %v2098_v30 = vmul.f32 -1.442695, %v1262_v63 }
0x19cd   :  { %v2268_v25 = vpop.eup %2267 }
0x19ce   :  { %1288 = vrot.lane.b32.xlu2 %v2268_v25, %s2500_s15 }
0x19d0   :  { %v1509_v39 = vpop.f32.mrf.mxu2 }
0x19d1   :  { %v1513_v7 = vrot.slane %v1509_v39, 6 }
0x19d3   :  { %v1515_v28 = vadd.f32 %v1513_v7, %v2876_v33 }
0x19d5   :  { %2269 = vtanh.f32 %v1515_v28  ;;  %v2109_v27 = vmul.f32 -1.442695, %v1515_v28 }
0x19d6   :  { %2271 = vpow2.f32 %v2098_v30 }
0x19db   :  { %v2270_v29 = vpop.eup %2269 }
0x19dc   :  { %1541 = vrot.lane.b32.xlu0 %v2270_v29, %s2500_s15  ;;  %v2272_v31 = vpop.eup %2271 }
0x19dd   :  { %v1266_v32 = vadd.f32 1.0, %v2272_v31 }
0x19df   :  { %2273 = vrcp.f32 %v1266_v32  ;;  %v1278_v38 = vand.u32 2147483648, %v1266_v32  ;;  %vm1272_vm0 = vweird.f32 %v1266_v32  ;;  %v1276_v40 = vand.u32 2147483647, %v1266_v32 }
0x19e0   :  { %2275 = vpow2.f32 %v2109_v27 }
0x19e1   :  { %v1279_v42 = vor.u32 1.1754944e-38, %v1278_v38  ;;  %vm1277_vm4 = vcmp.eq.f32.partialorder %v1276_v40, 8.507059e+37 }
0x19e5   :  { %v2274_v34 = vpop.eup %2273 }
0x19e6   :  { %v1268_v26 = vmul.f32 %v2274_v34, %v1266_v32  ;;  %vm1273_vm15 = vweird.f32 %v2274_v34  ;;  %v2276_v45 = vpop.eup %2275 }
0x19e7   :  { %vm1274_vm3 = vmor %vm1272_vm0, %vm1273_vm15  ;;  %v1519_v46 = vadd.f32 1.0, %v2276_v45 }
0x19e8   :  { %v1269_v35 = vsub.f32 1.0, %v1268_v26 }
0x19e9   :  { %2277 = vrcp.f32 %v1519_v46  ;;  %v1531_v51 = vand.u32 2147483648, %v1519_v46  ;;  %vm1525_vm6 = vweird.f32 %v1519_v46  ;;  %v1529_v53 = vand.u32 2147483647, %v1519_v46 }
0x19ea   :  { %v1270_v14 = vmul.f32 %v2274_v34, %v1269_v35 }
0x19eb   :  { %v1532_v54 = vor.u32 1.1754944e-38, %v1531_v51  ;;  %vm1530_vm9 = vcmp.eq.f32.partialorder %v1529_v53, 8.507059e+37 }
0x19ec   :  { %v1271_v37 = vadd.f32 %v2274_v34, %v1270_v14 }
0x19ee   :  { %v1275_v41 = vsel %vm1274_vm3, %v2274_v34, %v1271_v37 }
0x19ef   :  { %v1280_v43 = vsel %vm1277_vm4, %v1279_v42, %v1275_v41  ;;  %v2278_v20 = vpop.eup %2277 }
0x19f0   :  { %v1521_v47 = vmul.f32 %v2278_v20, %v1519_v46  ;;  %vm1526_vm5 = vweird.f32 %v2278_v20  ;;  %v1286_v61 = vmul.f32 %v1284_v58, %v1280_v43 }
0x19f1   :  { %vm1527_vm2 = vmor %vm1525_vm6, %vm1526_vm5 }
0x19f2   :  { %v1522_v48 = vsub.f32 1.0, %v1521_v47 }
0x19f4   :  { %v1523_v49 = vmul.f32 %v2278_v20, %v1522_v48 }
0x19f6   :  { %v1524_v50 = vadd.f32 %v2278_v20, %v1523_v49 }
0x19f8   :  { %v1528_v59 = vsel %vm1527_vm2, %v2278_v20, %v1524_v50 }
0x19f9   :  { %v1533_v56 = vsel %vm1530_vm9, %v1532_v54, %v1528_v59 }
0x19fa   :  { %v1539_v2 = vmul.f32 %v1537_v36, %v1533_v56 }
0x1a28   :  { %v1289_v10 = vpop.permute.xlu2 %1288 }
0x1a29   :  { %v1291_v44 = vmul.f32 %v1289_v10, %v1280_v43 }
0x1a2b   :  { %1293 = vrot.lane.b32.xlu1 %v1291_v44, %s2501_s3 }
0x1a4e   :  { %v1542_v55 = vpop.permute.xlu0 %1541 }
0x1a4f   :  { %v1544_v57 = vmul.f32 %v1542_v55, %v1533_v56 }
0x1a51   :  { %1546 = vrot.lane.b32.xlu2 %v1544_v57, %s2501_s3 }
0x1a9d   :  { %v1294_v62 = vpop.permute.xlu1 %1293 }
0x1a9e   :  { %v2909_v0 = vadd.f32 %v1294_v62, %v1286_v61 }
0x1aa0   :  { %2279 = vtanh.f32 %v2909_v0 }
0x1aa6   :  { %v2280_v1 = vpop.eup %2279 }
0x1aa7   :  { %1299 = vrot.lane.b32.xlu0 %v2280_v1, %s2501_s3 }
0x1aab   :  { %v1547_v3 = vpop.permute.xlu2 %1546 }
0x1aac   :  { %v1549_v5 = vadd.f32 %v1547_v3, %v1539_v2 }
0x1aae   :  { %2281 = vtanh.f32 %v1549_v5  ;;  %v1611_v41 = vrot.slane %v1549_v5, 6  ;;  %v1358_v5 = vrot.slane %v2909_v0, 6 }
0x1ab4   :  { %v2282_v8 = vpop.eup %2281 }
0x1ab5   :  { %1552 = vrot.lane.b32.xlu1 %v2282_v8, %s2501_s3 }
0x1b19   :  { %v1300_v9 = vpop.permute.xlu0 %1299 }
0x1b1a   :  { %v2915_v4 = vmul.f32 %v1300_v9, %v1280_v43 }
0x1b1c   :  { %v1308_v12 = vrot.slane %v2915_v4, 4 }
0x1b1e   :  { %1309 = vrot.lane.b32.xlu2 %v1308_v12, %s2502_s16 }
0x1b27   :  { %v1553_v13 = vpop.permute.xlu1 %1552 }
0x1b28   :  { %v2919_v16 = vmul.f32 %v1553_v13, %v1533_v56 }
0x1b2a   :  { %v1561_v17 = vrot.slane %v2919_v16, 2 }
0x1b2c   :  { %1562 = vrot.lane.b32.xlu0 %v1561_v17, %s2502_s16 }
0x1b78   :  { %v1310_v11 = vpop.permute.xlu2 %1309 }
0x1b79   :  { %2100 = vmatmul.msk.f32.vlgmr.msrb.gmra.mxu3 %vm181_vm8, %v1310_v11 }
0x1b7a   :  { %2119 = vmatpush.msk.msrb.mxu3 %vm185_vm1, %v2840_v24 }
0x1b7c   :  { %1797 = vmatpush.msrb.mxu3 %v2845_v60 }
0x1b9e   :  { %v1563_v19 = vpop.permute.xlu0 %1562 }
0x1b9f   :  { %2111 = vmatmul.msk.f32.vlgmr.msra.gmra.mxu3 %vm181_vm8, %v1563_v19 }
0x1bfc   :  { %v1330_v21 = vpop.f32.mrf.mxu3 }
0x1bfd   :  { %v1334_v34 = vrot.slane %v1330_v21, 2 }
0x1bff   :  { %v1336_v14 = vadd.f32 %v1334_v34, %v2823_v52 }
0x1c01   :  { %v2101_v52 = vmul.f32 -1.442695, %v1336_v14 }
0x1c22   :  { %v1583_v23 = vpop.f32.mrf.mxu3 }
0x1c23   :  { %v1587_v22 = vrot.slane %v1583_v23, 4 }
0x1c25   :  { %v1589_v18 = vadd.f32 %v1587_v22, %v2876_v33 }
0x1c27   :  { %2283 = vtanh.f32 %v1589_v18  ;;  %v2112_v25 = vmul.f32 -1.442695, %v1589_v18 }
0x1c29   :  { %2285 = vpow2.f32 %v2112_v25 }
0x1c2d   :  { %v2284_v63 = vpop.eup %2283 }
0x1c2e   :  { %1615 = vrot.lane.b32.xlu1 %v2284_v63, %s2500_s15 }
0x1c2f   :  { %v2286_v39 = vpop.eup %2285 }
0x1c30   :  { %v1593_v7 = vadd.f32 1.0, %v2286_v39 }
0x1c32   :  { %2287 = vrcp.f32 %v1593_v7  ;;  %v1605_v31 = vand.u32 2147483648, %v1593_v7  ;;  %vm1599_vm11 = vweird.f32 %v1593_v7  ;;  %v1603_v32 = vand.u32 2147483647, %v1593_v7 }
0x1c33   :  { %2289 = vtanh.f32 %v1336_v14 }
0x1c34   :  { %v1606_v35 = vor.u32 1.1754944e-38, %v1605_v31  ;;  %vm1604_vm0 = vcmp.eq.f32.partialorder %v1603_v32, 8.507059e+37 }
0x1c38   :  { %v2288_v24 = vpop.eup %2287 }
0x1c39   :  { %v1595_v28 = vmul.f32 %v2288_v24, %v1593_v7  ;;  %vm1600_vm10 = vweird.f32 %v2288_v24  ;;  %v2290_v40 = vpop.eup %2289 }
0x1c3a   :  { %vm1601_vm15 = vmor %vm1599_vm11, %vm1600_vm10 }
0x1c3b   :  { %v1596_v60 = vsub.f32 1.0, %v1595_v28 }
0x1c3d   :  { %v1597_v29 = vmul.f32 %v2288_v24, %v1596_v60 }
0x1c3f   :  { %v1598_v30 = vadd.f32 %v2288_v24, %v1597_v29 }
0x1c41   :  { %v1602_v26 = vsel %vm1601_vm15, %v2288_v24, %v1598_v30 }
0x1c42   :  { %v1607_v37 = vsel %vm1604_vm0, %v1606_v35, %v1602_v26 }
0x1c43   :  { %v1613_v42 = vmul.f32 %v1611_v41, %v1607_v37 }
0x1ca0   :  { %v1616_v27 = vpop.permute.xlu1 %1615 }
0x1ca1   :  { %v1618_v38 = vmul.f32 %v1616_v27, %v1607_v37 }
0x1ca3   :  { %1620 = vrot.lane.b32.xlu2 %v1618_v38, %s2501_s3 }
0x1cab   :  { %1362 = vrot.lane.b32.xlu2 %v2290_v40, %s2500_s15 }
0x1cfd   :  { %v1621_v43 = vpop.permute.xlu2 %1620 }
0x1cfe   :  { %v2933_v10 = vadd.f32 %v1621_v43, %v1613_v42 }
0x1d00   :  { %2291 = vtanh.f32 %v2933_v10  ;;  %v1685_v30 = vrot.slane %v2933_v10, 6 }
0x1d01   :  { %2293 = vpow2.f32 %v2101_v52 }
0x1d05   :  { %v1363_v57 = vpop.permute.xlu2 %1362 }
0x1d06   :  { %v2292_v44 = vpop.eup %2291 }
0x1d07   :  { %1626 = vrot.lane.b32.xlu0 %v2292_v44, %s2501_s3  ;;  %v2294_v45 = vpop.eup %2293 }
0x1d08   :  { %v1340_v46 = vadd.f32 1.0, %v2294_v45 }
0x1d0a   :  { %2295 = vrcp.f32 %v1340_v46  ;;  %v1352_v54 = vand.u32 2147483648, %v1340_v46  ;;  %vm1346_vm4 = vweird.f32 %v1340_v46  ;;  %v1350_v55 = vand.u32 2147483647, %v1340_v46 }
0x1d0c   :  { %v1353_v58 = vor.u32 1.1754944e-38, %v1352_v54  ;;  %vm1351_vm6 = vcmp.eq.f32.partialorder %v1350_v55, 8.507059e+37 }
0x1d10   :  { %v2296_v20 = vpop.eup %2295 }
0x1d11   :  { %v1342_v47 = vmul.f32 %v2296_v20, %v1340_v46  ;;  %vm1347_vm3 = vweird.f32 %v2296_v20 }
0x1d12   :  { %vm1348_vm5 = vmor %vm1346_vm4, %vm1347_vm3 }
0x1d13   :  { %v1343_v48 = vsub.f32 1.0, %v1342_v47 }
0x1d15   :  { %v1344_v49 = vmul.f32 %v2296_v20, %v1343_v48 }
0x1d17   :  { %v1345_v53 = vadd.f32 %v2296_v20, %v1344_v49 }
0x1d19   :  { %v1349_v56 = vsel %vm1348_vm5, %v2296_v20, %v1345_v53 }
0x1d1a   :  { %v1354_v61 = vsel %vm1351_vm6, %v1353_v58, %v1349_v56 }
0x1d1b   :  { %v1365_v62 = vmul.f32 %v1363_v57, %v1354_v61  ;;  %v1360_v9 = vmul.f32 %v1358_v5, %v1354_v61 }
0x1d79   :  { %v1627_v50 = vpop.permute.xlu0 %1626 }
0x1d7a   :  { %v2937_v51 = vmul.f32 %v1627_v50, %v1607_v37 }
0x1d7c   :  { %v1635_v59 = vrot.slane %v2937_v51, 4 }
0x1d7e   :  { %1636 = vrot.lane.b32.xlu1 %v1635_v59, %s2502_s16 }
0x1d86   :  { %1367 = vrot.lane.b32.xlu1 %v1365_v62, %s2501_s3 }
0x1df0   :  { %v1637_v1 = vpop.permute.xlu1 %1636 }
0x1df1   :  { %2114 = vmatmul.msk.f32.vlgmr.msra.gmra.mxu1 %vm181_vm8, %v1637_v1 }
0x1df8   :  { %v1368_v8 = vpop.permute.xlu1 %1367 }
0x1df9   :  { %v1370_v12 = vadd.f32 %v1368_v8, %v1360_v9 }
0x1e6e   :  { %v1657_v36 = vpop.f32.mrf.mxu1 }
0x1e6f   :  { %v1661_v2 = vrot.slane %v1657_v36, 2 }
0x1e71   :  { %v1663_v3 = vadd.f32 %v1661_v2, %v2876_v33 }
0x1e73   :  { %2297 = vtanh.f32 %v1663_v3  ;;  %v2115_v11 = vmul.f32 -1.442695, %v1663_v3 }
0x1e74   :  { %2299 = vtanh.f32 %v1370_v12 }
0x1e75   :  { %2301 = vpow2.f32 %v2115_v11 }
0x1e79   :  { %v2298_v13 = vpop.eup %2297 }
0x1e7a   :  { %1689 = vrot.lane.b32.xlu0 %v2298_v13, %s2500_s15  ;;  %v2300_v17 = vpop.eup %2299 }
0x1e7b   :  { %v2302_v19 = vpop.eup %2301 }
0x1e7c   :  { %v1667_v33 = vadd.f32 1.0, %v2302_v19 }
0x1e7e   :  { %2303 = vrcp.f32 %v1667_v33  ;;  %v1679_v63 = vand.u32 2147483648, %v1667_v33  ;;  %vm1673_vm9 = vweird.f32 %v1667_v33  ;;  %v1677_v25 = vand.u32 2147483647, %v1667_v33 }
0x1e80   :  { %v1680_v7 = vor.u32 1.1754944e-38, %v1679_v63  ;;  %vm1678_vm11 = vcmp.eq.f32.partialorder %v1677_v25, 8.507059e+37 }
0x1e82   :  { %1373 = vrot.lane.b32.xlu0 %v2300_v17, %s2501_s3 }
0x1e84   :  { %v2304_v0 = vpop.eup %2303 }
0x1e85   :  { %v1669_v21 = vmul.f32 %v2304_v0, %v1667_v33  ;;  %vm1674_vm2 = vweird.f32 %v2304_v0 }
0x1e86   :  { %vm1675_vm10 = vmor %vm1673_vm9, %vm1674_vm2 }
0x1e87   :  { %v1670_v23 = vsub.f32 1.0, %v1669_v21 }
0x1e89   :  { %v1671_v22 = vmul.f32 %v2304_v0, %v1670_v23 }
0x1e8a   :  { %1304 = vrot.lane.b32.xlu0 %v2915_v4, %s2502_s16 }
0x1e8b   :  { %v1672_v18 = vadd.f32 %v2304_v0, %v1671_v22 }
0x1e8d   :  { %v1676_v39 = vsel %vm1675_vm10, %v2304_v0, %v1672_v18 }
0x1e8e   :  { %v1681_v4 = vsel %vm1678_vm11, %v1680_v7, %v1676_v39 }
0x1e8f   :  { %v1687_v31 = vmul.f32 %v1685_v30, %v1681_v4 }
0x1eec   :  { %v1690_v24 = vpop.permute.xlu0 %1689 }
0x1eed   :  { %v1692_v28 = vmul.f32 %v1690_v24, %v1681_v4 }
0x1eef   :  { %1694 = vrot.lane.b32.xlu2 %v1692_v28, %s2501_s3 }
0x1ef4   :  { %v1374_v60 = vpop.permute.xlu0 %1373 }
0x1ef5   :  { %v1376_v14 = vmul.f32 %v1374_v60, %v1354_v61 }
0x1ef7   :  { %1230 = vrot.lane.b32.xlu2 %v2891_v15, %s2502_s16 }
0x1efc   :  { %v1305_v29 = vpop.permute.xlu0 %1304 }
0x1efd   :  { %1307 = vst.msk [vmem:[#allocation3 + $0x8] sm:$0x30] %vm398_vm13, %v1305_v29 }
0x1f49   :  { %v1695_v32 = vpop.permute.xlu2 %1694 }
0x1f4a   :  { %v1697_v34 = vadd.f32 %v1695_v32, %v1687_v31 }
0x1f4c   :  { %2305 = vtanh.f32 %v1697_v34  ;;  %v1756_v61 = vrot.slane %v1697_v34, 6 }
0x1f51   :  { %v1231_v26 = vpop.permute.xlu2 %1230 }
0x1f52   :  { %v2306_v35 = vpop.eup %2305  ;;  %1233 = vst.msk [vmem:[#allocation3 + $0x8] sm:$0xc] %vm323_vm12, %v1231_v26 }
0x1f53   :  { %1700 = vrot.lane.b32.xlu1 %v2306_v35, %s2501_s3 }
0x1f5b   :  { %1378 = vrot.lane.b32.xlu1 %v1376_v14, %s2502_s16 }
0x1fc5   :  { %v1701_v27 = vpop.permute.xlu1 %1700 }
0x1fc6   :  { %v2957_v15 = vmul.f32 %v1701_v27, %v1681_v4 }
0x1fc8   :  { %v1709_v37 = vrot.slane %v2957_v15, 6 }
0x1fca   :  { %1710 = vrot.lane.b32.xlu2 %v1709_v37, %s2502_s16 }
0x1fcd   :  { %v1379_v38 = vpop.permute.xlu1 %1378 }
0x1fce   :  { %1381 = vst.msk [vmem:[#allocation3 + $0x8] sm:$0xc0] %vm473_vm14, %v1379_v38 }
0x1fd5   :  { %v1383_v40 = vld [vmem:[#allocation3 + $0x8] sm:$0xff] }
0x1fd6   :  { %2104 = vmatmul.msk.f32.gmra.mxu0 %vm181_vm8, %v1383_v40 }
0x2024   :  { %v1711_v41 = vpop.permute.xlu2 %1710 }
0x2025   :  { %2117 = vmatmul.msk.f32.vlgmr.msra.gmra.mxu2 %vm181_vm8, %v1711_v41 }
0x2053   :  { %v1421_v42 = vpop.f32.mrf.mxu0 }
0x2054   :  { %v2965_v43 = vadd.f32 %v2873_v6, %v1421_v42 }
0x20a8   :  { %v1731_v10 = vpop.f32.mrf.mxu2 }
0x20a9   :  { %v1734_v44 = vadd.f32 %v1731_v10, %v2965_v43 }
0x20ab   :  { %2307 = vtanh.f32 %v1734_v44  ;;  %v2118_v45 = vmul.f32 -1.442695, %v1734_v44 }
0x20ad   :  { %2309 = vpow2.f32 %v2118_v45 }
0x20b1   :  { %v2308_v52 = vpop.eup %2307 }
0x20b2   :  { %1760 = vrot.lane.b32.xlu0 %v2308_v52, %s2500_s15 }
0x20b3   :  { %v2310_v46 = vpop.eup %2309 }
0x20b4   :  { %v1738_v20 = vadd.f32 1.0, %v2310_v46 }
0x20b6   :  { %2311 = vrcp.f32 %v1738_v20  ;;  %v1750_v6 = vand.u32 2147483648, %v1738_v20  ;;  %vm1744_vm0 = vweird.f32 %v1738_v20  ;;  %v1748_v59 = vand.u32 2147483647, %v1738_v20 }
0x20b8   :  { %v1751_v55 = vor.u32 1.1754944e-38, %v1750_v6  ;;  %vm1749_vm4 = vcmp.eq.f32.partialorder %v1748_v59, 8.507059e+37 }
0x20bc   :  { %v2312_v47 = vpop.eup %2311 }
0x20bd   :  { %v1740_v48 = vmul.f32 %v2312_v47, %v1738_v20  ;;  %vm1745_vm15 = vweird.f32 %v2312_v47 }
0x20be   :  { %vm1746_vm3 = vmor %vm1744_vm0, %vm1745_vm15 }
0x20bf   :  { %v1741_v49 = vsub.f32 1.0, %v1740_v48 }
0x20c1   :  { %v1742_v50 = vmul.f32 %v2312_v47, %v1741_v49 }
0x20c3   :  { %v1743_v53 = vadd.f32 %v2312_v47, %v1742_v50 }
0x20c5   :  { %v1747_v54 = vsel %vm1746_vm3, %v2312_v47, %v1743_v53 }
0x20c6   :  { %v1752_v57 = vsel %vm1749_vm4, %v1751_v55, %v1747_v54 }
0x20c7   :  { %v1758_v62 = vmul.f32 %v1756_v61, %v1752_v57 }
0x2124   :  { %v1761_v56 = vpop.permute.xlu0 %1760 }
0x2125   :  { %v1763_v58 = vmul.f32 %v1761_v56, %v1752_v57 }
0x2127   :  { %1765 = vrot.lane.b32.xlu1 %v1763_v58, %s2501_s3 }
0x2199   :  { %v1766_v1 = vpop.permute.xlu1 %1765 }
0x219a   :  { %v1768_v36 = vadd.f32 %v1766_v1, %v1758_v62 }
0x219c   :  { %2313 = vtanh.f32 %v1768_v36  ;;  %v1827_v60 = vrot.slane %v1768_v36, 6 }
0x21a2   :  { %v2314_v2 = vpop.eup %2313 }
0x21a3   :  { %1771 = vrot.lane.b32.xlu2 %v2314_v2, %s2501_s3 }
0x21fd   :  { %v1772_v3 = vpop.permute.xlu2 %1771 }
0x21fe   :  { %v1774_v5 = vmul.f32 %v1772_v3, %v1752_v57 }
0x2200   :  { %1776 = vrot.lane.b32.xlu0 %v1774_v5, %s2502_s16 }
0x2272   :  { %v1777_v8 = vpop.permute.xlu0 %1776 }
0x2273   :  { %1779 = vst.msk [vmem:[#allocation2 + $0x8] sm:$0x3] %vm251_vm7, %v1777_v8  ;;  %2120 = vmatmul.msk.f32.vlgmr.msrb.gmra.mxu3 %vm181_vm8, %v1777_v8 }
0x22f6   :  { %v1799_v9 = vpop.f32.mrf.mxu3 }
0x22f7   :  { %v1803_v12 = vrot.slane %v1799_v9, 6 }
0x22f9   :  { %v1805_v13 = vadd.f32 %v1803_v12, %v2965_v43 }
0x22fb   :  { %2315 = vtanh.f32 %v1805_v13  ;;  %v2121_v11 = vmul.f32 -1.442695, %v1805_v13 }
0x22fd   :  { %2317 = vpow2.f32 %v2121_v11 }
0x2301   :  { %v2316_v17 = vpop.eup %2315 }
0x2302   :  { %1831 = vrot.lane.b32.xlu1 %v2316_v17, %s2500_s15 }
0x2303   :  { %v2318_v19 = vpop.eup %2317 }
0x2304   :  { %v1809_v33 = vadd.f32 1.0, %v2318_v19 }
0x2306   :  { %2319 = vrcp.f32 %v1809_v33  ;;  %v1821_v63 = vand.u32 2147483648, %v1809_v33  ;;  %vm1815_vm5 = vweird.f32 %v1809_v33  ;;  %v1819_v25 = vand.u32 2147483647, %v1809_v33 }
0x2308   :  { %v1822_v7 = vor.u32 1.1754944e-38, %v1821_v63  ;;  %vm1820_vm2 = vcmp.eq.f32.partialorder %v1819_v25, 8.507059e+37 }
0x230c   :  { %v2320_v0 = vpop.eup %2319 }
0x230d   :  { %v1811_v21 = vmul.f32 %v2320_v0, %v1809_v33  ;;  %vm1816_vm7 = vweird.f32 %v2320_v0 }
0x230e   :  { %vm1817_vm6 = vmor %vm1815_vm5, %vm1816_vm7 }
0x230f   :  { %v1812_v23 = vsub.f32 1.0, %v1811_v21 }
0x2311   :  { %v1813_v22 = vmul.f32 %v2320_v0, %v1812_v23 }
0x2313   :  { %v1814_v18 = vadd.f32 %v2320_v0, %v1813_v22 }
0x2315   :  { %v1818_v39 = vsel %vm1817_vm6, %v2320_v0, %v1814_v18 }
0x2316   :  { %v1823_v4 = vsel %vm1820_vm2, %v1822_v7, %v1818_v39 }
0x2317   :  { %v1829_v29 = vmul.f32 %v1827_v60, %v1823_v4 }
0x2374   :  { %v1832_v24 = vpop.permute.xlu1 %1831 }
0x2375   :  { %v1834_v28 = vmul.f32 %v1832_v24, %v1823_v4 }
0x2377   :  { %1836 = vrot.lane.b32.xlu2 %v1834_v28, %s2501_s3 }
0x23d1   :  { %v1837_v30 = vpop.permute.xlu2 %1836 }
0x23d2   :  { %v1839_v31 = vadd.f32 %v1837_v30, %v1829_v29 }
0x23d4   :  { %2321 = vtanh.f32 %v1839_v31  ;;  %v1901_v54 = vrot.slane %v1839_v31, 6  ;;  %v2001_v31 = vld [vmem:[%s3030_s10] sm:$0xff] }
0x23da   :  { %v2322_v32 = vpop.eup %2321 }
0x23db   :  { %1842 = vrot.lane.b32.xlu0 %v2322_v32, %s2501_s3 }
0x244d   :  { %v1843_v34 = vpop.permute.xlu0 %1842 }
0x244e   :  { %v1845_v26 = vmul.f32 %v1843_v34, %v1823_v4 }
0x2450   :  { %v1851_v35 = vrot.slane %v1845_v26, 2 }
0x2452   :  { %1852 = vrot.lane.b32.xlu1 %v1851_v35, %s2502_s16 }
0x24c4   :  { %v1853_v14 = vpop.permute.xlu1 %1852 }
0x24c5   :  { %2123 = vmatmul.msk.f32.vlgmr.msrb.gmra.mxu0 %vm181_vm8, %v1853_v14 }
0x2542   :  { %v1873_v27 = vpop.f32.mrf.mxu0 }
0x2543   :  { %v1877_v37 = vrot.slane %v1873_v27, 4  ;;  %v2146_v27 = vld [vmem:[#allocation4] ss:$0 sm:$0xff] }
0x2545   :  { %v1879_v38 = vadd.f32 %v1877_v37, %v2965_v43 }
0x2547   :  { %2323 = vtanh.f32 %v1879_v38  ;;  %v2124_v41 = vmul.f32 -1.442695, %v1879_v38 }
0x2549   :  { %2325 = vpow2.f32 %v2124_v41 }
0x254d   :  { %v2324_v40 = vpop.eup %2323 }
0x254e   :  { %1905 = vrot.lane.b32.xlu2 %v2324_v40, %s2500_s15 }
0x254f   :  { %v2326_v42 = vpop.eup %2325 }
0x2550   :  { %v1883_v10 = vadd.f32 1.0, %v2326_v42 }
0x2552   :  { %2327 = vrcp.f32 %v1883_v10  ;;  %v1895_v47 = vand.u32 2147483648, %v1883_v10  ;;  %vm1889_vm10 = vweird.f32 %v1883_v10  ;;  %v1893_v48 = vand.u32 2147483647, %v1883_v10 }
0x2554   :  { %v1896_v50 = vor.u32 1.1754944e-38, %v1895_v47  ;;  %vm1894_vm15 = vcmp.eq.f32.partialorder %v1893_v48, 8.507059e+37 }
0x2558   :  { %v2328_v44 = vpop.eup %2327 }
0x2559   :  { %v1885_v52 = vmul.f32 %v2328_v44, %v1883_v10  ;;  %vm1890_vm9 = vweird.f32 %v2328_v44 }
0x255a   :  { %vm1891_vm11 = vmor %vm1889_vm10, %vm1890_vm9 }
0x255b   :  { %v1886_v45 = vsub.f32 1.0, %v1885_v52 }
0x255d   :  { %v1887_v46 = vmul.f32 %v2328_v44, %v1886_v45 }
0x255f   :  { %v1888_v20 = vadd.f32 %v2328_v44, %v1887_v46 }
0x2561   :  { %v1892_v49 = vsel %vm1891_vm11, %v2328_v44, %v1888_v20 }
0x2562   :  { %v1897_v6 = vsel %vm1894_vm15, %v1896_v50, %v1892_v49 }
0x2563   :  { %v1903_v55 = vmul.f32 %v1901_v54, %v1897_v6 }
0x25a8   :  { %v1906_v53 = vpop.permute.xlu2 %1905 }
0x25a9   :  { %v1908_v59 = vmul.f32 %v1906_v53, %v1897_v6 }
0x25ab   :  { %1910 = vrot.lane.b32.xlu0 %v1908_v59, %s2501_s3 }
0x261d   :  { %v1911_v56 = vpop.permute.xlu0 %1910 }
0x261e   :  { %v1913_v57 = vadd.f32 %v1911_v56, %v1903_v55 }
0x2620   :  { %2329 = vtanh.f32 %v1913_v57  ;;  %v1975_v7 = vrot.slane %v1913_v57, 6 }
0x2626   :  { %v2330_v58 = vpop.eup %2329 }
0x2627   :  { %1916 = vrot.lane.b32.xlu1 %v2330_v58, %s2501_s3 }
0x2699   :  { %v1917_v61 = vpop.permute.xlu1 %1916 }
0x269a   :  { %v1919_v62 = vmul.f32 %v1917_v61, %v1897_v6 }
0x269c   :  { %v1925_v1 = vrot.slane %v1919_v62, 4 }
0x269e   :  { %1926 = vrot.lane.b32.xlu2 %v1925_v1, %s2502_s16 }
0x26f8   :  { %v1927_v36 = vpop.permute.xlu2 %1926 }
0x26f9   :  { %2126 = vmatmul.msk.f32.vlgmr.msrb.gmra.mxu1 %vm181_vm8, %v1927_v36 }
0x2776   :  { %v1947_v2 = vpop.f32.mrf.mxu1 }
0x2777   :  { %v1951_v3 = vrot.slane %v1947_v2, 2 }
0x2779   :  { %v1953_v5 = vadd.f32 %v1951_v3, %v2965_v43 }
0x277b   :  { %2331 = vtanh.f32 %v1953_v5  ;;  %v2127_v9 = vmul.f32 -1.442695, %v1953_v5 }
0x277d   :  { %2333 = vpow2.f32 %v2127_v9 }
0x2781   :  { %v2332_v8 = vpop.eup %2331 }
0x2782   :  { %1979 = vrot.lane.b32.xlu0 %v2332_v8, %s2500_s15 }
0x2783   :  { %v2334_v12 = vpop.eup %2333 }
0x2784   :  { %v1957_v13 = vadd.f32 1.0, %v2334_v12 }
0x2786   :  { %2335 = vrcp.f32 %v1957_v13  ;;  %v1969_v43 = vand.u32 2147483648, %v1957_v13  ;;  %vm1963_vm3 = vweird.f32 %v1957_v13  ;;  %v1967_v21 = vand.u32 2147483647, %v1957_v13 }
0x2788   :  { %v1970_v22 = vor.u32 1.1754944e-38, %v1969_v43  ;;  %vm1968_vm7 = vcmp.eq.f32.partialorder %v1967_v21, 8.507059e+37 }
0x278a   :  { %1557 = vrot.lane.b32.xlu0 %v2919_v16, %s2502_s16 }
0x278c   :  { %v2336_v17 = vpop.eup %2335 }
0x278d   :  { %v1959_v11 = vmul.f32 %v2336_v17, %v1957_v13  ;;  %vm1964_vm0 = vweird.f32 %v2336_v17 }
0x278e   :  { %vm1965_vm4 = vmor %vm1963_vm3, %vm1964_vm0 }
0x278f   :  { %v1960_v19 = vsub.f32 1.0, %v1959_v11 }
0x2791   :  { %v1961_v33 = vmul.f32 %v2336_v17, %v1960_v19 }
0x2792   :  { %1847 = vrot.lane.b32.xlu0 %v1845_v26, %s2502_s16 }
0x2793   :  { %v1962_v0 = vadd.f32 %v2336_v17, %v1961_v33 }
0x2795   :  { %v1966_v23 = vsel %vm1965_vm4, %v2336_v17, %v1962_v0 }
0x2796   :  { %v1971_v18 = vsel %vm1968_vm7, %v1970_v22, %v1966_v23 }
0x2797   :  { %v1977_v24 = vmul.f32 %v1975_v7, %v1971_v18 }
0x27f4   :  { %v1980_v16 = vpop.permute.xlu0 %1979 }
0x27f5   :  { %v1982_v63 = vmul.f32 %v1980_v16, %v1971_v18 }
0x27f7   :  { %1984 = vrot.lane.b32.xlu1 %v1982_v63, %s2501_s3 }
0x27fc   :  { %v1558_v25 = vpop.permute.xlu0 %1557 }
0x27fd   :  { %1560 = vst.msk [vmem:[#allocation2] sm:$0xc] %vm323_vm12, %v1558_v25 }
0x27ff   :  { %1631 = vrot.lane.b32.xlu1 %v2937_v51, %s2502_s16  ;;  %v2002_v51 = vld [vmem:[%s3030_s10 + $0x8] sm:$0x3] }
0x2800   :  { %2128 = vmatpush.msk.msrb.mxu2 %vm185_vm1, %v2002_v51  ;;  %vm2039_vm1 = vcmask 7168  }
0x2802   :  { %2031 = vmatpush.msrb.mxu2 %v2001_v31 }
0x2804   :  { %v1848_v39 = vpop.permute.xlu0 %1847 }
0x2805   :  { %1850 = vst.msk [vmem:[#allocation2 + $0x8] sm:$0xc] %vm323_vm12, %v1848_v39 }
0x2807   :  { %1921 = vrot.lane.b32.xlu1 %v1919_v62, %s2502_s16 }
0x2869   :  { %v1985_v4 = vpop.permute.xlu1 %1984 }
0x286a   :  { %v1987_v28 = vadd.f32 %v1985_v4, %v1977_v24 }
0x286c   :  { %2337 = vtanh.f32 %v1987_v28 }
0x2871   :  { %v1632_v60 = vpop.permute.xlu1 %1631 }
0x2872   :  { %v2338_v29 = vpop.eup %2337  ;;  %1634 = vst.msk [vmem:[#allocation2] sm:$0x30] %vm398_vm13, %v1632_v60 }
0x2873   :  { %1990 = vrot.lane.b32.xlu2 %v2338_v29, %s2501_s3 }
0x2879   :  { %v1922_v30 = vpop.permute.xlu1 %1921 }
0x287a   :  { %1924 = vst.msk [vmem:[#allocation2 + $0x8] sm:$0x30] %vm398_vm13, %v1922_v30 }
0x287b   :  { %1705 = vrot.lane.b32.xlu2 %v2957_v15, %s2502_s16 }
0x28cd   :  { %v1991_v32 = vpop.permute.xlu2 %1990 }
0x28ce   :  { %v1993_v34 = vmul.f32 %v1991_v32, %v1971_v18 }
0x28d0   :  { %1995 = vrot.lane.b32.xlu2 %v1993_v34, %s2502_s16 }
0x28d5   :  { %v1706_v26 = vpop.permute.xlu2 %1705 }
0x28d6   :  { %1708 = vst.msk [vmem:[#allocation2] sm:$0xc0] %vm473_vm14, %v1706_v26 }
0x28dd   :  { %v1999_v35 = vld [vmem:[#allocation2] sm:$0xff] }
0x28de   :  { %2129 = vmatmul.msk.f32.vlgmr.msrb.gmra.mxu2 %vm181_vm8, %v1999_v35 }
0x292a   :  { %v1996_v15 = vpop.permute.xlu2 %1995 }
0x292b   :  { %1998 = vst.msk [vmem:[#allocation2 + $0x8] sm:$0xc0] %vm473_vm14, %v1996_v15 }
0x2932   :  { %v2000_v14 = vld [vmem:[#allocation2 + $0x8] sm:$0xff] }
0x2933   :  { %2130 = vmatmul.msk.f32.gmra.mxu2 %vm181_vm8, %v2000_v14 }
0x2961   :  { %v2033_v37 = vpop.f32.mrf.mxu2 }
0x2962   :  { %v2034_v38 = vadd.f32 %v2146_v27, %v2033_v37 }
0x2964   :  { %2040 = vst.msk [vmem:[%s3032_s12] sm:$0xff] %vm2039_vm1, %v2034_v38 }
0x29b6   :  { %v2036_v40 = vpop.f32.mrf.mxu2 }
0x29b7   :  { %v2037_v41 = vadd.f32 %v2146_v27, %v2036_v40 }
0x29b9   :  { %2041 = vst.msk [vmem:[%s3032_s12 + $0x8] sm:$0xff] %vm2039_vm1, %v2037_v41 }
0x29ba   :  { %2046 = vsyncpa [#allocation6], 1 }
0x29bb   :  { %2047 = vsyncpa [#allocation8], 1 }
0x29bc   :  { %2048 = vsyncpa [#allocation11], 1 }
0x29bd   :  { %2049 = vsyncpa [#allocation14], 1 }

</bundles_post_ra>
